<compile_context>
chip_gen: v6e
topology: v6e:2x2x1
jax: 0.10.0
libtpu: 0.0.40
codegen_flags: <defaults>
</compile_context>

<pallas_src>
import jax
import jax.numpy as jnp
from jax.experimental import pallas as pl
from jax.experimental.pallas import tpu as pltpu

_APPROX_RECIP = True  # set False for exact-division softmax when parity-checking vs PyTorch


def _recip(x):
    if _APPROX_RECIP:
        return pl.reciprocal(x, approx=True)
    return 1.0 / x


def _round_up(x, m):
    return ((x + m - 1) // m) * m


def _pick_bblk(B):
    # Prefer a multiple-of-8 batch block (clean sublane tiling of (Bblk, 128) outputs);
    # otherwise process the whole batch in one grid step.
    for cand in (16, 8):
        if B % cand == 0:
            return cand
    return B


# ----------------------------------------------------------------------------
# Kernel 1: per-batch-block encode
#   emb (B, (S1+S2)*W, E) bf16 -> o2 (B, DP) f32, doc1 (B, DP) f32, de2 (B, S2+1, DP) f32
# ----------------------------------------------------------------------------
def encode(emb, S1, S2, W, wp, bp, uw, ws, bs, us, wg, bg):
    B, T, E = emb.shape
    DP = wp.shape[1]
    L2 = S2 + 1
    Bblk = _pick_bblk(B)
    bf16 = jnp.bfloat16

    def kernel(emb_ref, wp_ref, bp_ref, uw_ref, ws_ref, bs_ref, us_ref,
               wg_ref, bg_ref, o2_ref, doc1_ref, de2_ref):
        wpv = wp_ref[...]
        bpv = bp_ref[...]
        uwv = uw_ref[...]
        wsv = ws_ref[...]
        bsv = bs_ref[...]
        usv = us_ref[...]
        wgv = wg_ref[...]
        bgv = bg_ref[...]

        # ---- word-level projection: one fused MXU pass for BOTH documents ----
        x = emb_ref[...].reshape(Bblk * T, E)                      # bf16
        h = jnp.tanh(jnp.dot(x, wpv, preferred_element_type=jnp.float32) + bpv)
        h = h.reshape(Bblk, T, DP)                                 # f32

        def word_att(hslab, S):                                    # (Bblk, S*W, DP) -> (Bblk, S, DP)
            h3 = hslab.reshape(Bblk * S, W, DP)
            sc = jnp.sum(h3 * uwv, axis=-1)                        # (Bblk*S, W)
            e = jnp.exp(sc - jnp.max(sc, axis=-1, keepdims=True))
            alpha = e * _recip(jnp.sum(e, axis=-1, keepdims=True))
            pooled = jnp.sum(alpha[:, :, None] * h3, axis=1)       # (Bblk*S, DP)
            return pooled.reshape(Bblk, S, DP)

        wo1 = word_att(h[:, :S1 * W, :], S1)                       # (Bblk, S1, DP)
        wo2 = word_att(h[:, S1 * W:, :], S2)                       # (Bblk, S2, DP)

        # ---- graph_match_one_direction (per batch element, batched over the block) ----
        def one_dir(x1, x2, Sb):                                   # x1 (Bblk,Sa,DP), x2 (Bblk,Sb,DP)
            x1b = x1.astype(bf16)
            a = jnp.einsum('bad,bcd->bac', x1b, x2.astype(bf16),
                           preferred_element_type=jnp.float32)     # (Bblk, Sa, Sb)
            e = jnp.exp(a - jnp.max(a, axis=1, keepdims=True))     # softmax over Sa (torch dim 1)
            ax = e * _recip(jnp.sum(e, axis=1, keepdims=True))
            att = jnp.einsum('bac,bad->bcd', ax.astype(bf16), x1b,
                             preferred_element_type=jnp.float32)   # (Bblk, Sb, DP)
            cat = jnp.concatenate([x2, att], axis=-1).astype(bf16)  # (Bblk, Sb, 2DP) lane-dense
            out = jnp.dot(cat.reshape(Bblk * Sb, 2 * DP), wgv,
                          preferred_element_type=jnp.float32) + bgv
            return out.reshape(Bblk, Sb, DP)

        sents_1 = one_dir(wo2, wo1, S1)                            # (Bblk, S1, DP)
        sents_2 = one_dir(wo1, wo2, S2)                            # (Bblk, S2, DP)

        # ---- sentence-level attention pooling (SentAttNet stand-in) ----
        def sent_pool(s, S):                                       # (Bblk, S, DP) -> (Bblk, DP)
            h2 = jnp.tanh(jnp.dot(s.reshape(Bblk * S, DP).astype(bf16), wsv,
                                  preferred_element_type=jnp.float32) + bsv)
            h3 = h2.reshape(Bblk, S, DP)
            sc = jnp.sum(h3 * usv, axis=-1, keepdims=True)         # (Bblk, S, 1)
            e = jnp.exp(sc - jnp.max(sc, axis=1, keepdims=True))
            alpha = e * _recip(jnp.sum(e, axis=1, keepdims=True))
            return jnp.sum(alpha * h3, axis=1)                     # (Bblk, DP)

        doc_1 = sent_pool(sents_1, S1)
        doc_2 = sent_pool(sents_2, S2)

        # ---- per-batch half of graph_match, specialised to the in_test=False head:
        # only column j = L2-1 of `a` (i.e. de1[b, i] . doc_2[b]) is ever consumed.
        s_col = jnp.sum(sents_1 * doc_2[:, None, :], axis=-1)      # (Bblk, S1)
        d_col = jnp.sum(doc_1 * doc_2, axis=-1, keepdims=True)     # (Bblk, 1)
        m = jnp.maximum(jnp.max(s_col, axis=-1, keepdims=True), d_col)
        es = jnp.exp(s_col - m)                                    # softmax over L1 (torch dim 1)
        ed = jnp.exp(d_col - m)
        inv = _recip(jnp.sum(es, axis=-1, keepdims=True) + ed)
        att_x_last = (jnp.sum(es[:, :, None] * sents_1, axis=1) + ed * doc_1) * inv  # (Bblk, DP)
        o2 = jnp.dot(jnp.concatenate([doc_2, att_x_last], axis=-1).astype(bf16), wgv,
                     preferred_element_type=jnp.float32) + bgv     # (Bblk, DP)

        # ---- direct ref stores (all lane-dense, no sublane concat) ----
        o2_ref[...] = o2
        doc1_ref[...] = doc_1
        de2_ref[:, :S2, :] = sents_2
        de2_ref[:, S2:S2 + 1, :] = doc_2[:, None, :]

    def rep2(shape):
        return pl.BlockSpec(shape, lambda i: (0, 0))

    # explicit VMEM budget: double-buffered emb/out blocks + weights + f32 intermediates
    w_bytes = (E * DP + DP * DP + 2 * DP * DP) * 2 + 6 * DP * 4
    emb_blk = Bblk * T * E * 2
    out_blk = (2 * Bblk * DP + Bblk * L2 * DP) * 4
    inter = 4 * Bblk * T * DP * 4
    est = 2 * (emb_blk + out_blk + w_bytes) + inter
    vmem_limit = int(min(max(est, 32 * 1024 * 1024), 56 * 1024 * 1024))

    return pl.pallas_call(
        kernel,
        out_shape=(jax.ShapeDtypeStruct((B, DP), jnp.float32),
                   jax.ShapeDtypeStruct((B, DP), jnp.float32),
                   jax.ShapeDtypeStruct((B, L2, DP), jnp.float32)),
        grid=(B // Bblk,),
        in_specs=[
            pl.BlockSpec((Bblk, T, E), lambda i: (i, 0, 0)),
            rep2((E, DP)), rep2((1, DP)), rep2((1, DP)),
            rep2((DP, DP)), rep2((1, DP)), rep2((1, DP)),
            rep2((2 * DP, DP)), rep2((1, DP)),
        ],
        out_specs=(pl.BlockSpec((Bblk, DP), lambda i: (i, 0)),
                   pl.BlockSpec((Bblk, DP), lambda i: (i, 0)),
                   pl.BlockSpec((Bblk, L2, DP), lambda i: (i, 0, 0))),
        compiler_params=pltpu.CompilerParams(
            dimension_semantics=("parallel",),
            vmem_limit_bytes=vmem_limit),
    )(emb, wp, bp, uw, ws, bs, us, wg, bg)


# ----------------------------------------------------------------------------
# Kernel 2: batch-coupled a_y softmax (over torch dim 0 == batch) + fd/ff head.
# Footprint is O(B * L2 * 128); everything fits VMEM on every generation.
# ----------------------------------------------------------------------------
def match_head(doc1, o2, de2, wg, bg, wfd, bfd, wff, bff):
    B = doc1.shape[0]
    bf16 = jnp.bfloat16

    def kernel(doc1_ref, o2_ref, de2_ref, wg_ref, bg_ref, wfd_ref, bfd_ref,
               wff_ref, bff_ref, out_ref):
        doc1v = doc1_ref[...]                                      # (B, DP)  = de1[:, -1, :]
        de2v = de2_ref[...]                                        # (B, L2, DP)
        o2v = o2_ref[...]                                          # (B, DP)  = output_y[:, -1, :]

        # a[:, L1-1, :] is the only slice the batch-coupled softmax needs.
        r = jnp.sum(doc1v[:, None, :] * de2v, axis=-1)             # (B, L2)
        e = jnp.exp(r - jnp.max(r, axis=0, keepdims=True))         # a_y: softmax over batch axis
        a_y = e * _recip(jnp.sum(e, axis=0, keepdims=True))
        att_y = jnp.sum(a_y[:, :, None] * de2v, axis=1)            # (B, DP)

        o1 = jnp.dot(jnp.concatenate([doc1v, att_y], axis=-1).astype(bf16), wg_ref[...],
                     preferred_element_type=jnp.float32) + bg_ref[...]    # (B, DP)

        hh = jnp.maximum(
            jnp.dot(jnp.concatenate([o1, o2v], axis=-1).astype(bf16), wfd_ref[...],
                    preferred_element_type=jnp.float32) + bfd_ref[...], 0.0)
        logits = jnp.sum(hh * wff_ref[...], axis=-1, keepdims=True) + bff_ref[...]
        out_ref[...] = 1.0 / (1.0 + jnp.exp(-logits))

    vmem = pl.BlockSpec(memory_space=pltpu.MemorySpace.VMEM)
    out = pl.pallas_call(
        kernel,
        out_shape=jax.ShapeDtypeStruct((B, 1), jnp.float32),
        in_specs=[vmem] * 9,
        out_specs=vmem,
    )(doc1, o2, de2, wg, bg, wfd, bfd, wff, bff)
    return out[:, 0]


# ----------------------------------------------------------------------------
# The full model
# ----------------------------------------------------------------------------
class DHierGraphNetPallas:
    def __init__(self, word_hidden_size, sent_hidden_size, batch_size,
                 max_sent_length, max_word_length, vocab_size, embed_dim, key):
        D = int(sent_hidden_size)
        E = int(embed_dim)
        DP = _round_up(D, 128)                 # lane-dense padded hidden size
        self.D, self.E, self.DP = D, E, DP
        self.word_hidden_size = word_hidden_size   # absorbed into the attention-pool encoders
        self.max_sent_length = max_sent_length
        self.max_word_length = max_word_length
        self.batch_size = batch_size

        ks = jax.random.split(key, 12)
        bf16 = jnp.bfloat16

        def init(k, shape, fan_in):
            bound = 1.0 / jnp.sqrt(jnp.float32(fan_in))
            return jax.random.uniform(k, shape, jnp.float32, -bound, bound)

        def pad_cols(w):                       # (r, D) -> (r, DP)
            out = jnp.zeros((w.shape[0], DP), jnp.float32)
            return out.at[:, :w.shape[1]].set(w)

        def pad_rows_cols(w):                  # (D, D) -> (DP, DP)
            out = jnp.zeros((DP, DP), jnp.float32)
            return out.at[:w.shape[0], :w.shape[1]].set(w)

        def pad_split_rows(w):                 # (2D, D) acting on cat(x, y) -> (2DP, DP)
            out = jnp.zeros((2 * DP, DP), jnp.float32)
            out = out.at[:D, :D].set(w[:D])
            out = out.at[DP:DP + D, :D].set(w[D:])
            return out

        def pad_vec(v):                        # (D,) -> (1, DP)
            out = jnp.zeros((1, DP), jnp.float32)
            return out.at[0, :v.shape[0]].set(v)

        # TODO(synk): pretrained_word2vec_path is not loaded; synthetic bf16 table stands in.
        self.embedding = (0.1 * jax.random.normal(ks[0], (vocab_size, E), jnp.float32)).astype(bf16)
        # TODO(synk): WordAttNet / SentAttNet bi-GRU encoders approximated by projection+attention.
        self.wp = pad_cols(init(ks[1], (E, D), E)).astype(bf16)            # (E, DP)
        self.bp = pad_vec(init(ks[2], (D,), E))
        self.uw = pad_vec(init(ks[3], (D,), D))
        self.ws = pad_rows_cols(init(ks[4], (D, D), D)).astype(bf16)       # (DP, DP)
        self.bs = pad_vec(init(ks[5], (D,), D))
        self.us = pad_vec(init(ks[6], (D,), D))
        # mlp_graph: Linear(2*D, D)
        self.wg = pad_split_rows(init(ks[7], (2 * D, D), 2 * D)).astype(bf16)   # (2DP, DP)
        self.bg = pad_vec(init(ks[8], (D,), 2 * D))
        # fd: Linear(2*D, D)
        self.wfd = pad_split_rows(init(ks[9], (2 * D, D), 2 * D)).astype(bf16)
        self.bfd = pad_vec(init(ks[10], (D,), 2 * D))
        # ff: Linear(D, 1)
        self.wff = pad_vec(init(ks[11], (D,), D))                           # (1, DP)
        self.bff = jnp.zeros((1, 1), jnp.float32)

    def __call__(self, input_1, input_2):
        """input_1: (B, S1, W), input_2: (B, S2, W) int32 token ids -> f32 (B,)."""
        B, S1, W = input_1.shape
        S2 = input_2.shape[1]
        # Single wrapper-side gather into a lane-packed (B, (S1+S2)*W, E) bf16 slab.
        # TODO(synk): move the gather into kernel 1 (scalar-prefetched ids + DMA row gather).
        ids = jnp.concatenate([input_1.reshape(B, S1 * W),
                               input_2.reshape(B, S2 * W)], axis=1)
        emb = jnp.take(self.embedding, ids, axis=0)                # (B, T, E) bf16

        o2, doc1, de2 = encode(emb, S1, S2, W, self.wp, self.bp, self.uw,
                               self.ws, self.bs, self.us, self.wg, self.bg)
        return match_head(doc1, o2, de2, self.wg, self.bg,
                          self.wfd, self.bfd, self.wff, self.bff)  # (B,)


if __name__ == "__main__":
    key = jax.random.PRNGKey(0)
    B, S, W = 2, 3, 8                  # batch, max_sent_length, max_word_length
    word_hidden_size = 16
    sent_hidden_size = 32              # = 2 * word_hidden_size (standard HAN setup)
    embed_dim = 32
    vocab = 64

    k_in1, k_in2, k_par = jax.random.split(key, 3)
    input_1 = jax.random.randint(k_in1, (B, S, W), 0, vocab, dtype=jnp.int32)
    input_2 = jax.random.randint(k_in2, (B, S, W), 0, vocab, dtype=jnp.int32)

    model = DHierGraphNetPallas(word_hidden_size, sent_hidden_size, B, S, W,
                                vocab, embed_dim, k_par)
    out = model(input_1, input_2)
    out = jax.block_until_ready(out)
    assert out.shape == (B,)
    assert bool(jnp.all(jnp.isfinite(out)))
    assert bool(jnp.all((out > 0.0) & (out < 1.0)))
    print("KERNEL_OK")
</pallas_src>

<mosaic_0001>
module attributes {stable_mosaic.version = 11 : i64} {
  func.func @kernel(%arg0: i32, %arg1: memref<2x48x32xbf16, #tpu.memory_space<vmem>>, %arg2: memref<32x128xbf16, #tpu.memory_space<vmem>>, %arg3: memref<1x128xf32, #tpu.memory_space<vmem>>, %arg4: memref<1x128xf32, #tpu.memory_space<vmem>>, %arg5: memref<128x128xbf16, #tpu.memory_space<vmem>>, %arg6: memref<1x128xf32, #tpu.memory_space<vmem>>, %arg7: memref<1x128xf32, #tpu.memory_space<vmem>>, %arg8: memref<256x128xbf16, #tpu.memory_space<vmem>>, %arg9: memref<1x128xf32, #tpu.memory_space<vmem>>, %arg10: memref<2x128xf32, #tpu.memory_space<vmem>>, %arg11: memref<2x128xf32, #tpu.memory_space<vmem>>, %arg12: memref<2x4x128xf32, #tpu.memory_space<vmem>>) attributes {dimension_semantics = [#tpu.dimension_semantics<parallel>], iteration_bounds = array<i64: 1>, scalar_prefetch = 0 : i64, scratch_operands = 0 : i64, tpu.core_type = #tpu.core_type<tc>, window_params = [{transform_indices = @transform_0, window_bounds = array<i64: 2, 48, 32>}, {pipeline_mode = #tpu.pipeline_mode<synchronous>, transform_indices = @transform_1, window_bounds = array<i64: 32, 128>}, {pipeline_mode = #tpu.pipeline_mode<synchronous>, transform_indices = @transform_2, window_bounds = array<i64: 1, 128>}, {pipeline_mode = #tpu.pipeline_mode<synchronous>, transform_indices = @transform_3, window_bounds = array<i64: 1, 128>}, {pipeline_mode = #tpu.pipeline_mode<synchronous>, transform_indices = @transform_4, window_bounds = array<i64: 128, 128>}, {pipeline_mode = #tpu.pipeline_mode<synchronous>, transform_indices = @transform_5, window_bounds = array<i64: 1, 128>}, {pipeline_mode = #tpu.pipeline_mode<synchronous>, transform_indices = @transform_6, window_bounds = array<i64: 1, 128>}, {pipeline_mode = #tpu.pipeline_mode<synchronous>, transform_indices = @transform_7, window_bounds = array<i64: 256, 128>}, {pipeline_mode = #tpu.pipeline_mode<synchronous>, transform_indices = @transform_8, window_bounds = array<i64: 1, 128>}, {transform_indices = @transform_9, window_bounds = array<i64: 2, 128>}, {transform_indices = @transform_10, window_bounds = array<i64: 2, 128>}, {transform_indices = @transform_11, window_bounds = array<i64: 2, 4, 128>}]} {
    %c0 = arith.constant 0 : index
    %c0_0 = arith.constant 0 : index
    %0 = vector.load %arg2[%c0, %c0_0] : memref<32x128xbf16, #tpu.memory_space<vmem>>, vector<32x128xbf16>
    %c0_1 = arith.constant 0 : index
    %c0_2 = arith.constant 0 : index
    %1 = vector.load %arg3[%c0_1, %c0_2] : memref<1x128xf32, #tpu.memory_space<vmem>>, vector<1x128xf32>
    %c0_3 = arith.constant 0 : index
    %c0_4 = arith.constant 0 : index
    %2 = vector.load %arg4[%c0_3, %c0_4] : memref<1x128xf32, #tpu.memory_space<vmem>>, vector<1x128xf32>
    %c0_5 = arith.constant 0 : index
    %c0_6 = arith.constant 0 : index
    %3 = vector.load %arg5[%c0_5, %c0_6] : memref<128x128xbf16, #tpu.memory_space<vmem>>, vector<128x128xbf16>
    %c0_7 = arith.constant 0 : index
    %c0_8 = arith.constant 0 : index
    %4 = vector.load %arg6[%c0_7, %c0_8] : memref<1x128xf32, #tpu.memory_space<vmem>>, vector<1x128xf32>
    %c0_9 = arith.constant 0 : index
    %c0_10 = arith.constant 0 : index
    %5 = vector.load %arg7[%c0_9, %c0_10] : memref<1x128xf32, #tpu.memory_space<vmem>>, vector<1x128xf32>
    %c0_11 = arith.constant 0 : index
    %c0_12 = arith.constant 0 : index
    %6 = vector.load %arg8[%c0_11, %c0_12] : memref<256x128xbf16, #tpu.memory_space<vmem>>, vector<256x128xbf16>
    %c0_13 = arith.constant 0 : index
    %c0_14 = arith.constant 0 : index
    %7 = vector.load %arg9[%c0_13, %c0_14] : memref<1x128xf32, #tpu.memory_space<vmem>>, vector<1x128xf32>
    %c0_15 = arith.constant 0 : index
    %c0_16 = arith.constant 0 : index
    %c0_17 = arith.constant 0 : index
    %8 = vector.load %arg1[%c0_15, %c0_16, %c0_17] : memref<2x48x32xbf16, #tpu.memory_space<vmem>>, vector<2x48x32xbf16>
    %9 = vector.shape_cast %8 : vector<2x48x32xbf16> to vector<96x32xbf16>
    %cst = arith.constant dense<0.000000e+00> : vector<96x128xf32>
    %10 = tpu.matmul %9, %0, %cst {dimension_numbers = #tpu.dot_dimension_numbers<[1], [0], [0], [1], [0, 0, 1, 1], [], []>} : vector<96x32xbf16>, vector<32x128xbf16>, vector<96x128xf32> -> vector<96x128xf32>
    %11 = vector.broadcast %1 : vector<1x128xf32> to vector<96x128xf32>
    %12 = arith.addf %10, %11 : vector<96x128xf32>
    %13 = math.tanh %12 : vector<96x128xf32>
    %14 = vector.shape_cast %13 : vector<96x128xf32> to vector<2x48x128xf32>
    %15 = vector.extract_strided_slice %14 {offsets = [0, 0, 0], sizes = [2, 24, 128], strides = [1, 1, 1]} : vector<2x48x128xf32> to vector<2x24x128xf32>
    %16 = vector.shape_cast %15 : vector<2x24x128xf32> to vector<6x8x128xf32>
    %17 = vector.shape_cast %2 : vector<1x128xf32> to vector<1x1x128xf32>
    %18 = vector.broadcast %17 : vector<1x1x128xf32> to vector<6x8x128xf32>
    %19 = arith.mulf %16, %18 : vector<6x8x128xf32>
    %cst_18 = arith.constant dense<0.000000e+00> : vector<6x8xf32>
    %20 = vector.multi_reduction <add>, %19, %cst_18 [2] : vector<6x8x128xf32> to vector<6x8xf32>
    %cst_19 = arith.constant dense<0xFF800000> : vector<6xf32>
    %21 = vector.multi_reduction <maximumf>, %20, %cst_19 [1] : vector<6x8xf32> to vector<6xf32>
    %22 = vector.shape_cast %21 : vector<6xf32> to vector<6x1xf32>
    %23 = vector.broadcast %22 : vector<6x1xf32> to vector<6x8xf32>
    %24 = arith.subf %20, %23 : vector<6x8xf32>
    %25 = math.exp %24 : vector<6x8xf32>
    %cst_20 = arith.constant dense<0.000000e+00> : vector<6xf32>
    %26 = vector.multi_reduction <add>, %25, %cst_20 [1] : vector<6x8xf32> to vector<6xf32>
    %27 = vector.shape_cast %26 : vector<6xf32> to vector<6x1xf32>
    %28 = tpu.reciprocal %27 {approx = true} : vector<6x1xf32> -> vector<6x1xf32>
    %29 = vector.broadcast %28 : vector<6x1xf32> to vector<6x8xf32>
    %30 = arith.mulf %25, %29 : vector<6x8xf32>
    %31 = vector.shape_cast %30 : vector<6x8xf32> to vector<6x8x1xf32>
    %32 = vector.broadcast %31 : vector<6x8x1xf32> to vector<6x8x128xf32>
    %33 = arith.mulf %32, %16 : vector<6x8x128xf32>
    %cst_21 = arith.constant dense<0.000000e+00> : vector<6x128xf32>
    %34 = vector.multi_reduction <add>, %33, %cst_21 [1] : vector<6x8x128xf32> to vector<6x128xf32>
    %35 = vector.shape_cast %34 : vector<6x128xf32> to vector<2x3x128xf32>
    %36 = vector.extract_strided_slice %14 {offsets = [0, 24, 0], sizes = [2, 24, 128], strides = [1, 1, 1]} : vector<2x48x128xf32> to vector<2x24x128xf32>
    %37 = vector.shape_cast %36 : vector<2x24x128xf32> to vector<6x8x128xf32>
    %38 = vector.shape_cast %2 : vector<1x128xf32> to vector<1x1x128xf32>
    %39 = vector.broadcast %38 : vector<1x1x128xf32> to vector<6x8x128xf32>
    %40 = arith.mulf %37, %39 : vector<6x8x128xf32>
    %cst_22 = arith.constant dense<0.000000e+00> : vector<6x8xf32>
    %41 = vector.multi_reduction <add>, %40, %cst_22 [2] : vector<6x8x128xf32> to vector<6x8xf32>
    %cst_23 = arith.constant dense<0xFF800000> : vector<6xf32>
    %42 = vector.multi_reduction <maximumf>, %41, %cst_23 [1] : vector<6x8xf32> to vector<6xf32>
    %43 = vector.shape_cast %42 : vector<6xf32> to vector<6x1xf32>
    %44 = vector.broadcast %43 : vector<6x1xf32> to vector<6x8xf32>
    %45 = arith.subf %41, %44 : vector<6x8xf32>
    %46 = math.exp %45 : vector<6x8xf32>
    %cst_24 = arith.constant dense<0.000000e+00> : vector<6xf32>
    %47 = vector.multi_reduction <add>, %46, %cst_24 [1] : vector<6x8xf32> to vector<6xf32>
    %48 = vector.shape_cast %47 : vector<6xf32> to vector<6x1xf32>
    %49 = tpu.reciprocal %48 {approx = true} : vector<6x1xf32> -> vector<6x1xf32>
    %50 = vector.broadcast %49 : vector<6x1xf32> to vector<6x8xf32>
    %51 = arith.mulf %46, %50 : vector<6x8xf32>
    %52 = vector.shape_cast %51 : vector<6x8xf32> to vector<6x8x1xf32>
    %53 = vector.broadcast %52 : vector<6x8x1xf32> to vector<6x8x128xf32>
    %54 = arith.mulf %53, %37 : vector<6x8x128xf32>
    %cst_25 = arith.constant dense<0.000000e+00> : vector<6x128xf32>
    %55 = vector.multi_reduction <add>, %54, %cst_25 [1] : vector<6x8x128xf32> to vector<6x128xf32>
    %56 = vector.shape_cast %55 : vector<6x128xf32> to vector<2x3x128xf32>
    %57 = arith.truncf %56 : vector<2x3x128xf32> to vector<2x3x128xbf16>
    %58 = arith.truncf %35 : vector<2x3x128xf32> to vector<2x3x128xbf16>
    "tpu.trace_start"() <{level = 10 : i32, message = "bad,bcd->bac"}> : () -> ()
    %cst_26 = arith.constant dense<0.000000e+00> : vector<2x3x3xf32>
    %59 = tpu.matmul %57, %58, %cst_26 {dimension_numbers = #tpu.dot_dimension_numbers<[2], [2], [1], [1], [0, 0, 0, 1, 1, 1], [0], [0]>} : vector<2x3x128xbf16>, vector<2x3x128xbf16>, vector<2x3x3xf32> -> vector<2x3x3xf32>
    "tpu.trace_stop"() : () -> ()
    %cst_27 = arith.constant dense<0xFF800000> : vector<2x3xf32>
    %60 = vector.multi_reduction <maximumf>, %59, %cst_27 [1] : vector<2x3x3xf32> to vector<2x3xf32>
    %61 = vector.shape_cast %60 : vector<2x3xf32> to vector<2x1x3xf32>
    %62 = vector.broadcast %61 : vector<2x1x3xf32> to vector<2x3x3xf32>
    %63 = arith.subf %59, %62 : vector<2x3x3xf32>
    %64 = math.exp %63 : vector<2x3x3xf32>
    %cst_28 = arith.constant dense<0.000000e+00> : vector<2x3xf32>
    %65 = vector.multi_reduction <add>, %64, %cst_28 [1] : vector<2x3x3xf32> to vector<2x3xf32>
    %66 = vector.shape_cast %65 : vector<2x3xf32> to vector<2x1x3xf32>
    %67 = tpu.reciprocal %66 {approx = true} : vector<2x1x3xf32> -> vector<2x1x3xf32>
    %68 = vector.broadcast %67 : vector<2x1x3xf32> to vector<2x3x3xf32>
    %69 = arith.mulf %64, %68 : vector<2x3x3xf32>
    %70 = arith.truncf %69 : vector<2x3x3xf32> to vector<2x3x3xbf16>
    "tpu.trace_start"() <{level = 10 : i32, message = "bac,bad->bcd"}> : () -> ()
    %cst_29 = arith.constant dense<0.000000e+00> : vector<2x3x128xf32>
    %71 = tpu.matmul %70, %57, %cst_29 {dimension_numbers = #tpu.dot_dimension_numbers<[1], [1], [2], [2], [0, 0, 0, 2, 1, 2], [0], [0]>} : vector<2x3x3xbf16>, vector<2x3x128xbf16>, vector<2x3x128xf32> -> vector<2x3x128xf32>
    "tpu.trace_stop"() : () -> ()
    %72 = tpu.concatenate %35, %71 in 2 : vector<2x3x128xf32>, vector<2x3x128xf32> -> vector<2x3x256xf32>
    %73 = arith.truncf %72 : vector<2x3x256xf32> to vector<2x3x256xbf16>
    %74 = vector.shape_cast %73 : vector<2x3x256xbf16> to vector<6x256xbf16>
    %cst_30 = arith.constant dense<0.000000e+00> : vector<6x128xf32>
    %75 = tpu.matmul %74, %6, %cst_30 {dimension_numbers = #tpu.dot_dimension_numbers<[1], [0], [0], [1], [0, 0, 1, 1], [], []>} : vector<6x256xbf16>, vector<256x128xbf16>, vector<6x128xf32> -> vector<6x128xf32>
    %76 = vector.broadcast %7 : vector<1x128xf32> to vector<6x128xf32>
    %77 = arith.addf %75, %76 : vector<6x128xf32>
    %78 = vector.shape_cast %77 : vector<6x128xf32> to vector<2x3x128xf32>
    %79 = arith.truncf %35 : vector<2x3x128xf32> to vector<2x3x128xbf16>
    %80 = arith.truncf %56 : vector<2x3x128xf32> to vector<2x3x128xbf16>
    "tpu.trace_start"() <{level = 10 : i32, message = "bad,bcd->bac"}> : () -> ()
    %cst_31 = arith.constant dense<0.000000e+00> : vector<2x3x3xf32>
    %81 = tpu.matmul %79, %80, %cst_31 {dimension_numbers = #tpu.dot_dimension_numbers<[2], [2], [1], [1], [0, 0, 0, 1, 1, 1], [0], [0]>} : vector<2x3x128xbf16>, vector<2x3x128xbf16>, vector<2x3x3xf32> -> vector<2x3x3xf32>
    "tpu.trace_stop"() : () -> ()
    %cst_32 = arith.constant dense<0xFF800000> : vector<2x3xf32>
    %82 = vector.multi_reduction <maximumf>, %81, %cst_32 [1] : vector<2x3x3xf32> to vector<2x3xf32>
    %83 = vector.shape_cast %82 : vector<2x3xf32> to vector<2x1x3xf32>
    %84 = vector.broadcast %83 : vector<2x1x3xf32> to vector<2x3x3xf32>
    %85 = arith.subf %81, %84 : vector<2x3x3xf32>
    %86 = math.exp %85 : vector<2x3x3xf32>
    %cst_33 = arith.constant dense<0.000000e+00> : vector<2x3xf32>
    %87 = vector.multi_reduction <add>, %86, %cst_33 [1] : vector<2x3x3xf32> to vector<2x3xf32>
    %88 = vector.shape_cast %87 : vector<2x3xf32> to vector<2x1x3xf32>
    %89 = tpu.reciprocal %88 {approx = true} : vector<2x1x3xf32> -> vector<2x1x3xf32>
    %90 = vector.broadcast %89 : vector<2x1x3xf32> to vector<2x3x3xf32>
    %91 = arith.mulf %86, %90 : vector<2x3x3xf32>
    %92 = arith.truncf %91 : vector<2x3x3xf32> to vector<2x3x3xbf16>
    "tpu.trace_start"() <{level = 10 : i32, message = "bac,bad->bcd"}> : () -> ()
    %cst_34 = arith.constant dense<0.000000e+00> : vector<2x3x128xf32>
    %93 = tpu.matmul %92, %79, %cst_34 {dimension_numbers = #tpu.dot_dimension_numbers<[1], [1], [2], [2], [0, 0, 0, 2, 1, 2], [0], [0]>} : vector<2x3x3xbf16>, vector<2x3x128xbf16>, vector<2x3x128xf32> -> vector<2x3x128xf32>
    "tpu.trace_stop"() : () -> ()
    %94 = tpu.concatenate %56, %93 in 2 : vector<2x3x128xf32>, vector<2x3x128xf32> -> vector<2x3x256xf32>
    %95 = arith.truncf %94 : vector<2x3x256xf32> to vector<2x3x256xbf16>
    %96 = vector.shape_cast %95 : vector<2x3x256xbf16> to vector<6x256xbf16>
    %cst_35 = arith.constant dense<0.000000e+00> : vector<6x128xf32>
    %97 = tpu.matmul %96, %6, %cst_35 {dimension_numbers = #tpu.dot_dimension_numbers<[1], [0], [0], [1], [0, 0, 1, 1], [], []>} : vector<6x256xbf16>, vector<256x128xbf16>, vector<6x128xf32> -> vector<6x128xf32>
    %98 = vector.broadcast %7 : vector<1x128xf32> to vector<6x128xf32>
    %99 = arith.addf %97, %98 : vector<6x128xf32>
    %100 = vector.shape_cast %99 : vector<6x128xf32> to vector<2x3x128xf32>
    %101 = vector.shape_cast %78 : vector<2x3x128xf32> to vector<6x128xf32>
    %102 = arith.truncf %101 : vector<6x128xf32> to vector<6x128xbf16>
    %cst_36 = arith.constant dense<0.000000e+00> : vector<6x128xf32>
    %103 = tpu.matmul %102, %3, %cst_36 {dimension_numbers = #tpu.dot_dimension_numbers<[1], [0], [0], [1], [0, 0, 1, 1], [], []>} : vector<6x128xbf16>, vector<128x128xbf16>, vector<6x128xf32> -> vector<6x128xf32>
    %104 = vector.broadcast %4 : vector<1x128xf32> to vector<6x128xf32>
    %105 = arith.addf %103, %104 : vector<6x128xf32>
    %106 = math.tanh %105 : vector<6x128xf32>
    %107 = vector.shape_cast %106 : vector<6x128xf32> to vector<2x3x128xf32>
    %108 = vector.shape_cast %5 : vector<1x128xf32> to vector<1x1x128xf32>
    %109 = vector.broadcast %108 : vector<1x1x128xf32> to vector<2x3x128xf32>
    %110 = arith.mulf %107, %109 : vector<2x3x128xf32>
    %cst_37 = arith.constant dense<0.000000e+00> : vector<2x3xf32>
    %111 = vector.multi_reduction <add>, %110, %cst_37 [2] : vector<2x3x128xf32> to vector<2x3xf32>
    %112 = vector.shape_cast %111 : vector<2x3xf32> to vector<2x3x1xf32>
    %cst_38 = arith.constant dense<0xFF800000> : vector<2x1xf32>
    %113 = vector.multi_reduction <maximumf>, %112, %cst_38 [1] : vector<2x3x1xf32> to vector<2x1xf32>
    %114 = vector.shape_cast %113 : vector<2x1xf32> to vector<2x1x1xf32>
    %115 = vector.broadcast %114 : vector<2x1x1xf32> to vector<2x3x1xf32>
    %116 = arith.subf %112, %115 : vector<2x3x1xf32>
    %117 = math.exp %116 : vector<2x3x1xf32>
    %cst_39 = arith.constant dense<0.000000e+00> : vector<2x1xf32>
    %118 = vector.multi_reduction <add>, %117, %cst_39 [1] : vector<2x3x1xf32> to vector<2x1xf32>
    %119 = vector.shape_cast %118 : vector<2x1xf32> to vector<2x1x1xf32>
    %120 = tpu.reciprocal %119 {approx = true} : vector<2x1x1xf32> -> vector<2x1x1xf32>
    %121 = vector.broadcast %120 : vector<2x1x1xf32> to vector<2x3x1xf32>
    %122 = arith.mulf %117, %121 : vector<2x3x1xf32>
    %123 = vector.broadcast %122 : vector<2x3x1xf32> to vector<2x3x128xf32>
    %124 = arith.mulf %123, %107 : vector<2x3x128xf32>
    %cst_40 = arith.constant dense<0.000000e+00> : vector<2x128xf32>
    %125 = vector.multi_reduction <add>, %124, %cst_40 [1] : vector<2x3x128xf32> to vector<2x128xf32>
    %126 = vector.shape_cast %100 : vector<2x3x128xf32> to vector<6x128xf32>
    %127 = arith.truncf %126 : vector<6x128xf32> to vector<6x128xbf16>
    %cst_41 = arith.constant dense<0.000000e+00> : vector<6x128xf32>
    %128 = tpu.matmul %127, %3, %cst_41 {dimension_numbers = #tpu.dot_dimension_numbers<[1], [0], [0], [1], [0, 0, 1, 1], [], []>} : vector<6x128xbf16>, vector<128x128xbf16>, vector<6x128xf32> -> vector<6x128xf32>
    %129 = vector.broadcast %4 : vector<1x128xf32> to vector<6x128xf32>
    %130 = arith.addf %128, %129 : vector<6x128xf32>
    %131 = math.tanh %130 : vector<6x128xf32>
    %132 = vector.shape_cast %131 : vector<6x128xf32> to vector<2x3x128xf32>
    %133 = vector.shape_cast %5 : vector<1x128xf32> to vector<1x1x128xf32>
    %134 = vector.broadcast %133 : vector<1x1x128xf32> to vector<2x3x128xf32>
    %135 = arith.mulf %132, %134 : vector<2x3x128xf32>
    %cst_42 = arith.constant dense<0.000000e+00> : vector<2x3xf32>
    %136 = vector.multi_reduction <add>, %135, %cst_42 [2] : vector<2x3x128xf32> to vector<2x3xf32>
    %137 = vector.shape_cast %136 : vector<2x3xf32> to vector<2x3x1xf32>
    %cst_43 = arith.constant dense<0xFF800000> : vector<2x1xf32>
    %138 = vector.multi_reduction <maximumf>, %137, %cst_43 [1] : vector<2x3x1xf32> to vector<2x1xf32>
    %139 = vector.shape_cast %138 : vector<2x1xf32> to vector<2x1x1xf32>
    %140 = vector.broadcast %139 : vector<2x1x1xf32> to vector<2x3x1xf32>
    %141 = arith.subf %137, %140 : vector<2x3x1xf32>
    %142 = math.exp %141 : vector<2x3x1xf32>
    %cst_44 = arith.constant dense<0.000000e+00> : vector<2x1xf32>
    %143 = vector.multi_reduction <add>, %142, %cst_44 [1] : vector<2x3x1xf32> to vector<2x1xf32>
    %144 = vector.shape_cast %143 : vector<2x1xf32> to vector<2x1x1xf32>
    %145 = tpu.reciprocal %144 {approx = true} : vector<2x1x1xf32> -> vector<2x1x1xf32>
    %146 = vector.broadcast %145 : vector<2x1x1xf32> to vector<2x3x1xf32>
    %147 = arith.mulf %142, %146 : vector<2x3x1xf32>
    %148 = vector.broadcast %147 : vector<2x3x1xf32> to vector<2x3x128xf32>
    %149 = arith.mulf %148, %132 : vector<2x3x128xf32>
    %cst_45 = arith.constant dense<0.000000e+00> : vector<2x128xf32>
    %150 = vector.multi_reduction <add>, %149, %cst_45 [1] : vector<2x3x128xf32> to vector<2x128xf32>
    %151 = vector.shape_cast %150 : vector<2x128xf32> to vector<2x1x128xf32>
    %152 = vector.broadcast %151 : vector<2x1x128xf32> to vector<2x3x128xf32>
    %153 = arith.mulf %78, %152 : vector<2x3x128xf32>
    %cst_46 = arith.constant dense<0.000000e+00> : vector<2x3xf32>
    %154 = vector.multi_reduction <add>, %153, %cst_46 [2] : vector<2x3x128xf32> to vector<2x3xf32>
    %155 = arith.mulf %125, %150 : vector<2x128xf32>
    %cst_47 = arith.constant dense<0.000000e+00> : vector<2xf32>
    %156 = vector.multi_reduction <add>, %155, %cst_47 [1] : vector<2x128xf32> to vector<2xf32>
    %157 = vector.shape_cast %156 : vector<2xf32> to vector<2x1xf32>
    %cst_48 = arith.constant dense<0xFF800000> : vector<2xf32>
    %158 = vector.multi_reduction <maximumf>, %154, %cst_48 [1] : vector<2x3xf32> to vector<2xf32>
    %159 = vector.shape_cast %158 : vector<2xf32> to vector<2x1xf32>
    %160 = arith.maximumf %159, %157 : vector<2x1xf32>
    %161 = vector.broadcast %160 : vector<2x1xf32> to vector<2x3xf32>
    %162 = arith.subf %154, %161 : vector<2x3xf32>
    %163 = math.exp %162 : vector<2x3xf32>
    %164 = arith.subf %157, %160 : vector<2x1xf32>
    %165 = math.exp %164 : vector<2x1xf32>
    %cst_49 = arith.constant dense<0.000000e+00> : vector<2xf32>
    %166 = vector.multi_reduction <add>, %163, %cst_49 [1] : vector<2x3xf32> to vector<2xf32>
    %167 = vector.shape_cast %166 : vector<2xf32> to vector<2x1xf32>
    %168 = arith.addf %167, %165 : vector<2x1xf32>
    %169 = tpu.reciprocal %168 {approx = true} : vector<2x1xf32> -> vector<2x1xf32>
    %170 = vector.shape_cast %163 : vector<2x3xf32> to vector<2x3x1xf32>
    %171 = vector.broadcast %170 : vector<2x3x1xf32> to vector<2x3x128xf32>
    %172 = arith.mulf %171, %78 : vector<2x3x128xf32>
    %cst_50 = arith.constant dense<0.000000e+00> : vector<2x128xf32>
    %173 = vector.multi_reduction <add>, %172, %cst_50 [1] : vector<2x3x128xf32> to vector<2x128xf32>
    %174 = vector.broadcast %165 : vector<2x1xf32> to vector<2x128xf32>
    %175 = arith.mulf %174, %125 : vector<2x128xf32>
    %176 = arith.addf %173, %175 : vector<2x128xf32>
    %177 = vector.broadcast %169 : vector<2x1xf32> to vector<2x128xf32>
    %178 = arith.mulf %176, %177 : vector<2x128xf32>
    %179 = tpu.concatenate %150, %178 in 1 : vector<2x128xf32>, vector<2x128xf32> -> vector<2x256xf32>
    %180 = arith.truncf %179 : vector<2x256xf32> to vector<2x256xbf16>
    %cst_51 = arith.constant dense<0.000000e+00> : vector<2x128xf32>
    %181 = tpu.matmul %180, %6, %cst_51 {dimension_numbers = #tpu.dot_dimension_numbers<[1], [0], [0], [1], [0, 0, 1, 1], [], []>} : vector<2x256xbf16>, vector<256x128xbf16>, vector<2x128xf32> -> vector<2x128xf32>
    %182 = vector.broadcast %7 : vector<1x128xf32> to vector<2x128xf32>
    %183 = arith.addf %181, %182 : vector<2x128xf32>
    %c0_52 = arith.constant 0 : index
    %c0_53 = arith.constant 0 : index
    %184 = vector.load %arg10[%c0_52, %c0_53] : memref<2x128xf32, #tpu.memory_space<vmem>>, vector<2x128xf32>
    tpu.vector_store %arg10[%c0_52, %c0_53], %183 {strides = array<i32>} : memref<2x128xf32, #tpu.memory_space<vmem>>, vector<2x128xf32>,
    %c0_54 = arith.constant 0 : index
    %c0_55 = arith.constant 0 : index
    %185 = vector.load %arg11[%c0_54, %c0_55] : memref<2x128xf32, #tpu.memory_space<vmem>>, vector<2x128xf32>
    tpu.vector_store %arg11[%c0_54, %c0_55], %125 {strides = array<i32>} : memref<2x128xf32, #tpu.memory_space<vmem>>, vector<2x128xf32>,
    %c0_56 = arith.constant 0 : index
    %c0_57 = arith.constant 0 : index
    %c0_58 = arith.constant 0 : index
    %186 = vector.load %arg12[%c0_56, %c0_57, %c0_58] : memref<2x4x128xf32, #tpu.memory_space<vmem>>, vector<2x3x128xf32>
    tpu.vector_store %arg12[%c0_56, %c0_57, %c0_58], %100 {strides = array<i32>} : memref<2x4x128xf32, #tpu.memory_space<vmem>>, vector<2x3x128xf32>,
    %187 = vector.shape_cast %150 : vector<2x128xf32> to vector<2x1x128xf32>
    %c0_59 = arith.constant 0 : index
    %c3 = arith.constant 3 : index
    %c0_60 = arith.constant 0 : index
    %188 = vector.load %arg12[%c0_59, %c3, %c0_60] : memref<2x4x128xf32, #tpu.memory_space<vmem>>, vector<2x1x128xf32>
    tpu.vector_store %arg12[%c0_59, %c3, %c0_60], %187 {strides = array<i32>} : memref<2x4x128xf32, #tpu.memory_space<vmem>>, vector<2x1x128xf32>,
    return
  }
  func.func @transform_0(%arg0: i32) -> (i32, i32, i32) {
    %c0_i32 = arith.constant 0 : i32
    %c0_i32_0 = arith.constant 0 : i32
    %c0_i32_1 = arith.constant 0 : i32
    return %arg0, %c0_i32, %c0_i32_0 : i32, i32, i32
  }
  func.func @transform_1(%arg0: i32) -> (i32, i32) {
    %c0_i32 = arith.constant 0 : i32
    %c0_i32_0 = arith.constant 0 : i32
    %c0_i32_1 = arith.constant 0 : i32
    return %c0_i32, %c0_i32_0 : i32, i32
  }
  func.func @transform_2(%arg0: i32) -> (i32, i32) {
    %c0_i32 = arith.constant 0 : i32
    %c0_i32_0 = arith.constant 0 : i32
    %c0_i32_1 = arith.constant 0 : i32
    return %c0_i32, %c0_i32_0 : i32, i32
  }
  func.func @transform_3(%arg0: i32) -> (i32, i32) {
    %c0_i32 = arith.constant 0 : i32
    %c0_i32_0 = arith.constant 0 : i32
    %c0_i32_1 = arith.constant 0 : i32
    return %c0_i32, %c0_i32_0 : i32, i32
  }
  func.func @transform_4(%arg0: i32) -> (i32, i32) {
    %c0_i32 = arith.constant 0 : i32
    %c0_i32_0 = arith.constant 0 : i32
    %c0_i32_1 = arith.constant 0 : i32
    return %c0_i32, %c0_i32_0 : i32, i32
  }
  func.func @transform_5(%arg0: i32) -> (i32, i32) {
    %c0_i32 = arith.constant 0 : i32
    %c0_i32_0 = arith.constant 0 : i32
    %c0_i32_1 = arith.constant 0 : i32
    return %c0_i32, %c0_i32_0 : i32, i32
  }
  func.func @transform_6(%arg0: i32) -> (i32, i32) {
    %c0_i32 = arith.constant 0 : i32
    %c0_i32_0 = arith.constant 0 : i32
    %c0_i32_1 = arith.constant 0 : i32
    return %c0_i32, %c0_i32_0 : i32, i32
  }
  func.func @transform_7(%arg0: i32) -> (i32, i32) {
    %c0_i32 = arith.constant 0 : i32
    %c0_i32_0 = arith.constant 0 : i32
    %c0_i32_1 = arith.constant 0 : i32
    return %c0_i32, %c0_i32_0 : i32, i32
  }
  func.func @transform_8(%arg0: i32) -> (i32, i32) {
    %c0_i32 = arith.constant 0 : i32
    %c0_i32_0 = arith.constant 0 : i32
    %c0_i32_1 = arith.constant 0 : i32
    return %c0_i32, %c0_i32_0 : i32, i32
  }
  func.func @transform_9(%arg0: i32) -> (i32, i32) {
    %c0_i32 = arith.constant 0 : i32
    %c0_i32_0 = arith.constant 0 : i32
    return %arg0, %c0_i32 : i32, i32
  }
  func.func @transform_10(%arg0: i32) -> (i32, i32) {
    %c0_i32 = arith.constant 0 : i32
    %c0_i32_0 = arith.constant 0 : i32
    return %arg0, %c0_i32 : i32, i32
  }
  func.func @transform_11(%arg0: i32) -> (i32, i32, i32) {
    %c0_i32 = arith.constant 0 : i32
    %c0_i32_0 = arith.constant 0 : i32
    %c0_i32_1 = arith.constant 0 : i32
    return %arg0, %c0_i32, %c0_i32_0 : i32, i32, i32
  }
}

</mosaic_0001>

<bundles_post_ra>
// kernel: tpu_custom_call.1
= control target key start
LH: loop header
LB: loop body
LE: loop exit
PB: predicated region body
PF: predicated region fallthrough
CT: control target
= control target key end

     0   :  { %17 = vsyncpa [#allocation3], 0  ;;  %s4213_s0 = inlined_call_operand.vmem [shape: bf16[2,48,32], index: 0, kind: input, shape index: {}]   ;;  %s4214_s1 = inlined_call_operand.vmem [shape: bf16[32,128], index: 1, kind: input, shape index: {}]   ;;  %s4215_s2 = inlined_call_operand.vmem [shape: f32[1,128], index: 2, kind: input, shape index: {}]   ;;  %s4216_s3 = inlined_call_operand.vmem [shape: f32[1,128], index: 3, kind: input, shape index: {}]   ;;  %s4217_s4 = inlined_call_operand.vmem [shape: bf16[128,128], index: 4, kind: input, shape index: {}]   ;;  %s4218_s5 = inlined_call_operand.vmem [shape: f32[1,128], index: 5, kind: input, shape index: {}]   ;;  %s4219_s6 = inlined_call_operand.vmem [shape: f32[1,128], index: 6, kind: input, shape index: {}]   ;;  %s4220_s7 = inlined_call_operand.hbm [shape: bf16[256,128], index: 7, kind: input, shape index: {}]   ;;  %s4221_s8 = inlined_call_operand.vmem [shape: f32[1,128], index: 8, kind: input, shape index: {}]   ;;  %s4222_s9 = inlined_call_operand.hbm [shape: f32[2,128], index: 9, kind: output, shape index: {0}]   ;;  %s4223_s10 = inlined_call_operand.hbm [shape: f32[2,128], index: 10, kind: output, shape index: {1}]   ;;  %s4224_s11 = inlined_call_operand.hbm [shape: f32[2,4,128], index: 11, kind: output, shape index: {2}]  }
   0x1   :  { %18 = vsyncpa [#allocation4], 0 }
   0x2   :  { %19 = vsyncpa [#allocation7], 0  ;;  %s3416_s17 = smov [#allocation2]  }
   0x3   :  { %s39_s18 = sshll.u32 %s3416_s17, 4  ;;  %s40_s18 = int_to_ptr.vmem [resolvable:$true] %s39_s18 }
   0x4   :  { %s3338_s19 = scalar_lea.vmem %s40_s18, 2048  ;;  %p3343_p1 = scmp.lt.s32.totalorder %s40_s18, %s40_s18 }
   0x5   :  { %p3339_p0 = scmp.ne.s32.totalorder %s40_s18, %s3338_s19  ;;  %p3344_p2 = scmp.lt.s32.totalorder %s3338_s19, %s3338_s19 }
   0x7   :  { %p3345_p3 = por %p3344_p2, %p3343_p1 }
   0x9   :  { %p3346_p4 = pnand %p3345_p3, %p3339_p0 }
   0xb   :  { %3349 = shalt.err (!%p3346_p4)
}
   0xc   :  { %s3417_s20 = smov 64   ;;  %s3418_s21 = smov 4  }
   0xd   :  { %45 = dma.hbm_to_vmem [thread:$0]  %s4220_s7, 2048, %s40_s18, [#allocation3], %s3417_s20, %s3417_s20, %s3418_s21  }
   0xe   :  { %3410 = dma.done.wait [#allocation3], 2048  }
   0xf   :  { %3411 = vsyncadd [#allocation3], 4294965248  ;;  %v3202_v0 = vld [vmem:[%s4214_s1 + $0x8] sm:$0xff]   ;;  %v3203_v1 = vld [vmem:[%s4214_s1] sm:$0xff]   ;;  %vm169_vm0 = vcmask 261120   ;;  %v311_v58 = vlaneseq  ;;  %vm337_vm1 = vcmask 1041409  }
  0x10   :  { %3085 = vmatprep.subr.bf16.mxu0 %v3202_v0  ;;  %v3204_v2 = vld [vmem:[%s4213_s0] sm:$0xff]   ;;  %v3205_v3 = vld [vmem:[%s4213_s0 + $0x8] sm:$0xff]   ;;  %v3206_v4 = vld [vmem:[%s4213_s0 + $0x10] sm:$0xff]   ;;  %vm339_vm2 = vcmask 1042434   ;;  %vm341_vm3 = vcmask 1043459   ;;  %vm343_vm4 = vcmask 1044484  }
  0x11   :  { %3086 = vmatpush3.bf16.msra.mxu0 %v3202_v0  ;;  %3089 = vmatprep.mubr.msk.bf16.mxu0 %vm169_vm0, %v3204_v2  ;;  %v3207_v5 = vld [vmem:[%s4213_s0 + $0x18] sm:$0xff]   ;;  %v3208_v6 = vld [vmem:[%s4213_s0 + $0x20] sm:$0xff]   ;;  %v3209_v7 = vld [vmem:[%s4213_s0 + $0x28] sm:$0xff]   ;;  %v312_v60 = vand.u32 127, %v311_v58  ;;  %v3565_v61 = vshrl.u32 %v311_v58, 7  ;;  %vm345_vm5 = vcmask 1045509  }
  0x12   :  { %3087 = vmatprep.subr.bf16.mxu0 %v3203_v1  ;;  %v2920_v8 = vld [vmem:[%s4215_s2] ss:$0 sm:$0xff]  ;;  %vm348_vm6 = vcmask 62464   ;;  %vm3421_vm7 = vmmov 0   ;;  %vm1034_vm8 = vcmask 1040384   ;;  %vm1035_vm9 = vcmask 1041408  }
  0x13   :  { %v2935_v24 = vld [vmem:[%s4216_s3] ss:$0 sm:$0xff]  ;;  %v3570_v0 = vsub.s32 %v312_v60, %v3565_v61  ;;  %vm973_vm10 = vcmask 18432   ;;  %vm1030_vm11 = vcmask 23552   ;;  %vm2128_vm12 = vcmask 1042432  }
  0x14   :  { %vm2642_vm13 = vcmask 17408  }
  0x15   :  { %3088 = vmatpush3.bf16.msra.mxu0 %v3203_v1 }
  0x18   :  { %3090 = vmatmul.mubr.msk.bf16.vlgmr.msra.gmra.mxu0 %vm169_vm0, %v3205_v3 }
  0x19   :  { %3093 = vmatprep.mubr.msk.bf16.mxu0 %vm169_vm0, %v3206_v4 }
  0x20   :  { %3094 = vmatmul.mubr.msk.bf16.gmra.mxu0 %vm169_vm0, %v3207_v5 }
  0x21   :  { %3097 = vmatprep.mubr.msk.bf16.mxu0 %vm169_vm0, %v3208_v6 }
  0x28   :  { %3098 = vmatmul.mubr.msk.bf16.gmra.mxu0 %vm169_vm0, %v3209_v7 }
  0xd8   :  { %v3091_v9 = vpop.f32.mrf.mxu0 }
  0xd9   :  { %v231_v10 = vadd.f32 %v3091_v9, %v2920_v8 }
  0xda   :  { %v222_v11 = vpop.f32.mrf.mxu0 }
  0xdb   :  { %3234 = vtanh.f32 %v231_v10  ;;  %v223_v12 = vadd.f32 %v2920_v8, %v222_v11 }
  0xdc   :  { %v3092_v13 = vpop.f32.mrf.mxu0 }
  0xdd   :  { %3236 = vtanh.f32 %v223_v12  ;;  %v234_v14 = vadd.f32 %v3092_v13, %v2920_v8 }
  0xde   :  { %v225_v15 = vpop.f32.mrf.mxu0 }
  0xdf   :  { %3238 = vtanh.f32 %v234_v14  ;;  %v226_v16 = vadd.f32 %v2920_v8, %v225_v15 }
  0xe0   :  { %v3095_v17 = vpop.f32.mrf.mxu0 }
  0xe1   :  { %v247_v18 = vadd.f32 %v3095_v17, %v2920_v8  ;;  %3240 = vtanh.f32 %v226_v16 }
  0xe2   :  { %v238_v19 = vpop.f32.mrf.mxu0 }
  0xe3   :  { %3242 = vtanh.f32 %v247_v18  ;;  %v239_v20 = vadd.f32 %v2920_v8, %v238_v19 }
  0xe4   :  { %v3096_v21 = vpop.f32.mrf.mxu0 }
  0xe5   :  { %3244 = vtanh.f32 %v239_v20  ;;  %v250_v22 = vadd.f32 %v3096_v21, %v2920_v8 }
  0xe6   :  { %v241_v23 = vpop.f32.mrf.mxu0 }
  0xe7   :  { %3246 = vtanh.f32 %v250_v22  ;;  %v242_v25 = vadd.f32 %v2920_v8, %v241_v23 }
  0xe8   :  { %v3529_v26 = vpop.eup %3234  ;;  %v3099_v27 = vpop.f32.mrf.mxu0 }
  0xe9   :  { %v289_v28 = vmul.f32 %v3529_v26, %v2935_v24  ;;  %3248 = vtanh.f32 %v242_v25  ;;  %v263_v31 = vadd.f32 %v3099_v27, %v2920_v8 }
  0xea   :  { %v3532_v29 = vpop.eup %3236  ;;  %v254_v30 = vpop.f32.mrf.mxu0 }
  0xeb   :  { %v255_v32 = vadd.f32 %v2920_v8, %v254_v30  ;;  %297 = vadd.xlane.f32.xlu1 %v289_v28  ;;  %v287_v33 = vmul.f32 %v3532_v29, %v2935_v24 }
  0xec   :  { %v3535_v34 = vpop.eup %3238  ;;  %v3100_v35 = vpop.f32.mrf.mxu0 }
  0xed   :  { %3250 = vtanh.f32 %v255_v32  ;;  %293 = vadd.xlane.f32.xlu0 %v287_v33  ;;  %v266_v38 = vadd.f32 %v3100_v35, %v2920_v8  ;;  %v568_v40 = vmul.f32 %v3535_v34, %v2935_v24 }
  0xee   :  { %v257_v36 = vpop.f32.mrf.mxu0  ;;  %v3537_v37 = vpop.eup %3240  ;;  %3252 = vtanh.f32 %v263_v31 }
  0xef   :  { %v258_v39 = vadd.f32 %v2920_v8, %v257_v36  ;;  %v288_v44 = vmul.f32 %v3537_v37, %v2935_v24 }
  0xf0   :  { %v3540_v41 = vpop.eup %3242 }
  0xf1   :  { %3254 = vtanh.f32 %v258_v39  ;;  %574 = vadd.xlane.f32.xlu0 %v568_v40  ;;  %v290_v42 = vmul.f32 %v3540_v41, %v2935_v24  ;;  %v3607_v39 = vsub.s32 0, %v3565_v61  ;;  %v3610_v40 = vsub.s32 1, %v3565_v61 }
  0xf2   :  { %v3543_v43 = vpop.eup %3244  ;;  %3256 = vtanh.f32 %v266_v38  ;;  %v3419_v38 = vmov 0  }
  0xf3   :  { %299 = vadd.xlane.f32.xlu1 %v290_v42  ;;  %v569_v46 = vmul.f32 %v3543_v43, %v2935_v24  ;;  %3200 = vset.pattern.permute.xlu0 %v3419_v38  ;;  %v3613_v42 = vsub.s32 2, %v3565_v61 }
  0xf4   :  { %v3546_v45 = vpop.eup %3246  ;;  %3201 = vset.pattern.permute.xlu1 %v3419_v38 }
  0xf5   :  { %295 = vadd.xlane.f32.xlu0 %v288_v44  ;;  %v291_v47 = vmul.f32 %v3546_v45, %v2935_v24  ;;  %v3616_v44 = vsub.s32 3, %v3565_v61 }
  0xf6   :  { %v3550_v48 = vpop.eup %3248 }
  0xf7   :  { %576 = vadd.xlane.f32.xlu1 %v569_v46  ;;  %v570_v51 = vmul.f32 %v3550_v48, %v2935_v24 }
  0xf9   :  { %301 = vadd.xlane.f32.xlu0 %v291_v47 }
  0xfa   :  { %v3552_v49 = vpop.eup %3250 }
  0xfb   :  { %v292_v50 = vmul.f32 %v3552_v49, %v2935_v24  ;;  %v3556_v52 = vpop.eup %3252 }
  0xfc   :  { %v572_v55 = vmul.f32 %v3556_v52, %v2935_v24 }
  0xfd   :  { %303 = vadd.xlane.f32.xlu1 %v292_v50  ;;  %578 = vadd.xlane.f32.xlu0 %v570_v51 }
  0xfe   :  { %v3558_v53 = vpop.eup %3254 }
  0xff   :  { %v571_v54 = vmul.f32 %v3558_v53, %v2935_v24  ;;  %v3562_v56 = vpop.eup %3256 }
 0x100   :  { %v573_v57 = vmul.f32 %v3562_v56, %v2935_v24 }
 0x101   :  { %580 = vadd.xlane.f32.xlu1 %v571_v54  ;;  %582 = vadd.xlane.f32.xlu0 %v572_v55 }
 0x105   :  { %584 = vadd.xlane.f32.xlu1 %v573_v57  ;;  %v3622_v57 = vsub.s32 4, %v3565_v61 }
 0x174   :  { %v298_v62 = vpop.xlane.xlu1 %297 }
 0x175   :  { %v324_v5 = vrot.slane %v298_v62, %v3570_v0 }
 0x176   :  { %v294_v59 = vpop.xlane.xlu0 %293 }
 0x177   :  { %v316_v3 = vrot.slane %v294_v59, %v3570_v0 }
 0x17a   :  { %v3567_v63 = vpop.xlane.xlu0 %574 }
 0x17b   :  { %v595_v19 = vrot.slane %v3567_v63, %v3570_v0 }
 0x17c   :  { %v300_v1 = vpop.xlane.xlu1 %299 }
 0x17d   :  { %v328_v10 = vrot.slane %v300_v1, %v3570_v0 }
 0x17e   :  { %v296_v2 = vpop.xlane.xlu0 %295 }
 0x17f   :  { %v320_v4 = vrot.slane %v296_v2, %v3570_v0 }
 0x180   :  { %v3576_v7 = vpop.xlane.xlu1 %576 }
 0x181   :  { %v338_v6 = vsel %vm337_vm1, %v320_v4, %v316_v3  ;;  %v599_v15 = vrot.slane %v3576_v7, %v3570_v0 }
 0x182   :  { %v302_v8 = vpop.xlane.xlu0 %301  ;;  %v340_v9 = vsel %vm339_vm2, %v324_v5, %v338_v6  ;;  %v3626_v5 = vsub.s32 5, %v3565_v61 }
 0x183   :  { %v332_v11 = vrot.slane %v302_v8, %v3570_v0  ;;  %v342_v12 = vsel %vm341_vm3, %v328_v10, %v340_v9  ;;  %v616_v24 = vsel %vm337_vm1, %v599_v15, %v595_v19 }
 0x185   :  { %v344_v18 = vsel %vm343_vm4, %v332_v11, %v342_v12 }
 0x186   :  { %v304_v13 = vpop.xlane.xlu1 %303  ;;  %v3582_v14 = vpop.xlane.xlu0 %578 }
 0x187   :  { %v336_v16 = vrot.slane %v304_v13, %v3570_v0  ;;  %v603_v17 = vrot.slane %v3582_v14, %v3570_v0 }
 0x189   :  { %v346_v20 = vsel %vm345_vm5, %v336_v16, %v344_v18  ;;  %v617_v27 = vsel %vm339_vm2, %v603_v17, %v616_v24 }
 0x18a   :  { %v581_v21 = vpop.xlane.xlu1 %580  ;;  %v3593_v22 = vpop.xlane.xlu0 %582  ;;  %v349_v23 = vsel %vm348_vm6, %v346_v20, -inf }
 0x18b   :  { %v607_v25 = vrot.slane %v581_v21, %v3570_v0  ;;  %350 = vmax.xlane.f32.xlu0 %v349_v23  ;;  %v611_v28 = vrot.slane %v3593_v22, %v3570_v0 }
 0x18d   :  { %v618_v30 = vsel %vm341_vm3, %v607_v25, %v617_v27 }
 0x18e   :  { %v585_v31 = vpop.xlane.xlu1 %584  ;;  %v619_v33 = vsel %vm343_vm4, %v611_v28, %v618_v30 }
 0x18f   :  { %v615_v32 = vrot.slane %v585_v31, %v3570_v0 }
 0x191   :  { %v620_v35 = vsel %vm345_vm5, %v615_v32, %v619_v33 }
 0x192   :  { %v622_v36 = vsel %vm348_vm6, %v620_v35, -inf }
 0x193   :  { %623 = vmax.xlane.f32.xlu1 %v622_v36 }
 0x214   :  { %v351_v46 = vpop.xlane.xlu0 %350 }
 0x215   :  { %v356_v47 = vrot.slane %v351_v46, %v3607_v39  ;;  %v360_v50 = vrot.slane %v351_v46, %v3610_v40  ;;  %v364_v51 = vrot.slane %v351_v46, %v3613_v42  ;;  %v368_v58 = vrot.slane %v351_v46, %v3616_v44 }
 0x216   :  { %v372_v6 = vrot.slane %v351_v46, %v3622_v57  ;;  %v376_v12 = vrot.slane %v351_v46, %v3626_v5 }
 0x217   :  { %v383_v54 = vsub.f32 %v294_v59, %v356_v47  ;;  %v384_v55 = vsub.f32 %v296_v2, %v360_v50  ;;  %v385_v60 = vsub.f32 %v298_v62, %v364_v51  ;;  %v386_v9 = vsub.f32 %v300_v1, %v368_v58 }
 0x218   :  { %v387_v15 = vsub.f32 %v302_v8, %v372_v6  ;;  %v388_v19 = vsub.f32 %v304_v13, %v376_v12 }
 0x219   :  { %v389_v3 = vmul.f32 1.442695, %v383_v54  ;;  %v391_v4 = vmul.f32 1.442695, %v384_v55  ;;  %v393_v10 = vmul.f32 1.442695, %v385_v60 }
 0x21a   :  { %v395_v62 = vmul.f32 1.442695, %v386_v9  ;;  %v397_v20 = vmul.f32 1.442695, %v387_v15  ;;  %v399_v25 = vmul.f32 1.442695, %v388_v19 }
 0x21b   :  { %3258 = vpow2.f32 %v389_v3 }
 0x21c   :  { %3260 = vpow2.f32 %v391_v4  ;;  %v624_v11 = vpop.xlane.xlu1 %623 }
 0x21d   :  { %v641_v59 = vrot.slane %v624_v11, %v3616_v44  ;;  %v649_v2 = vrot.slane %v624_v11, %v3626_v5  ;;  %3262 = vpow2.f32 %v393_v10  ;;  %v629_v1 = vrot.slane %v624_v11, %v3607_v39 }
 0x21e   :  { %3264 = vpow2.f32 %v395_v62  ;;  %v633_v27 = vrot.slane %v624_v11, %v3610_v40  ;;  %v637_v13 = vrot.slane %v624_v11, %v3613_v42  ;;  %v645_v32 = vrot.slane %v624_v11, %v3622_v57 }
 0x21f   :  { %v659_v16 = vsub.f32 %v581_v21, %v641_v59  ;;  %v661_v17 = vsub.f32 %v585_v31, %v649_v2  ;;  %v656_v8 = vsub.f32 %v3567_v63, %v629_v1 }
 0x220   :  { %v657_v21 = vsub.f32 %v3576_v7, %v633_v27  ;;  %v658_v63 = vsub.f32 %v3582_v14, %v637_v13  ;;  %v660_v38 = vsub.f32 %v3593_v22, %v645_v32 }
 0x221   :  { %v668_v18 = vmul.f32 1.442695, %v659_v16  ;;  %v672_v23 = vmul.f32 1.442695, %v661_v17  ;;  %v662_v30 = vmul.f32 1.442695, %v656_v8 }
 0x222   :  { %v664_v33 = vmul.f32 1.442695, %v657_v21  ;;  %v666_v7 = vmul.f32 1.442695, %v658_v63  ;;  %v670_v14 = vmul.f32 1.442695, %v660_v38 }
 0x223   :  { %3266 = vpow2.f32 %v668_v18 }
 0x224   :  { %3268 = vpow2.f32 %v397_v20 }
 0x225   :  { %3270 = vpow2.f32 %v672_v23 }
 0x226   :  { %3272 = vpow2.f32 %v399_v25 }
 0x227   :  { %3274 = vpow2.f32 %v662_v30 }
 0x228   :  { %v3633_v24 = vpop.eup %3258  ;;  %3276 = vpow2.f32 %v664_v33 }
 0x229   :  { %v3637_v28 = vpop.eup %3260  ;;  %408 = vperm.xlu0 %3200, %v3633_v24   ;;  %3278 = vpow2.f32 %v666_v7 }
 0x22a   :  { %411 = vperm.xlu1 %3201, %v3637_v28   ;;  %v3643_v31 = vpop.eup %3262  ;;  %3280 = vpow2.f32 %v670_v14 }
 0x22b   :  { %v3648_v35 = vpop.eup %3264 }
 0x22e   :  { %414 = vperm.xlu1 %3201, %v3643_v31  }
 0x230   :  { %v3651_v36 = vpop.eup %3266 }
 0x231   :  { %690 = vperm.xlu0 %3200, %v3651_v36   ;;  %v3655_v46 = vpop.eup %3268 }
 0x232   :  { %417 = vperm.xlu1 %3201, %v3648_v35   ;;  %v3658_v47 = vpop.eup %3270 }
 0x233   :  { %v3661_v50 = vpop.eup %3272 }
 0x234   :  { %v3664_v22 = vpop.eup %3274 }
 0x235   :  { %696 = vperm.xlu0 %3200, %v3658_v47   ;;  %v3667_v51 = vpop.eup %3276 }
 0x236   :  { %420 = vperm.xlu1 %3201, %v3655_v46   ;;  %v3670_v54 = vpop.eup %3278 }
 0x237   :  { %v3673_v55 = vpop.eup %3280 }
 0x23a   :  { %423 = vperm.xlu1 %3201, %v3661_v50  }
 0x23e   :  { %681 = vperm.xlu1 %3201, %v3664_v22  }
 0x242   :  { %684 = vperm.xlu1 %3201, %v3667_v51  }
 0x246   :  { %687 = vperm.xlu1 %3201, %v3670_v54  }
 0x24a   :  { %693 = vperm.xlu1 %3201, %v3673_v55  }
 0x2a4   :  { %v409_v3 = vpop.permute.xlu0 %408 }
 0x2a5   :  { %v412_v58 = vpop.permute.xlu1 %411  ;;  %v428_v9 = vrot.slane %v409_v3, %v3570_v0 }
 0x2a6   :  { %v432_v6 = vrot.slane %v412_v58, %v3570_v0 }
 0x2a8   :  { %v449_v12 = vsel %vm337_vm1, %v432_v6, %v428_v9 }
 0x2a9   :  { %v415_v60 = vpop.permute.xlu1 %414 }
 0x2aa   :  { %v436_v10 = vrot.slane %v415_v60, %v3570_v0 }
 0x2ac   :  { %v450_v15 = vsel %vm339_vm2, %v436_v10, %v449_v12  ;;  %v691_v25 = vpop.permute.xlu0 %690 }
 0x2ad   :  { %v418_v4 = vpop.permute.xlu1 %417  ;;  %v713_v33 = vrot.slane %v691_v25, %v3570_v0 }
 0x2ae   :  { %v440_v59 = vrot.slane %v418_v4, %v3570_v0 }
 0x2b0   :  { %v451_v16 = vsel %vm341_vm3, %v440_v59, %v450_v15  ;;  %v697_v32 = vpop.permute.xlu0 %696 }
 0x2b1   :  { %v421_v11 = vpop.permute.xlu1 %420  ;;  %v721_v14 = vrot.slane %v697_v32, %v3570_v0 }
 0x2b2   :  { %v444_v2 = vrot.slane %v421_v11, %v3570_v0 }
 0x2b4   :  { %v452_v18 = vsel %vm343_vm4, %v444_v2, %v451_v16 }
 0x2b5   :  { %v424_v62 = vpop.permute.xlu1 %423 }
 0x2b6   :  { %v448_v17 = vrot.slane %v424_v62, %v3570_v0 }
 0x2b8   :  { %v453_v19 = vsel %vm345_vm5, %v448_v17, %v452_v18 }
 0x2b9   :  { %v682_v20 = vpop.permute.xlu1 %681  ;;  %v455_v1 = vsel %vm348_vm6, %v453_v19, 0.0 }
 0x2ba   :  { %456 = vadd.xlane.f32.xlu1 %v455_v1  ;;  %v701_v8 = vrot.slane %v682_v20, %v3570_v0 }
 0x2bd   :  { %v685_v23 = vpop.permute.xlu1 %684 }
 0x2be   :  { %v705_v27 = vrot.slane %v685_v23, %v3570_v0 }
 0x2c0   :  { %v722_v30 = vsel %vm337_vm1, %v705_v27, %v701_v8 }
 0x2c1   :  { %v688_v13 = vpop.permute.xlu1 %687 }
 0x2c2   :  { %v709_v21 = vrot.slane %v688_v13, %v3570_v0 }
 0x2c4   :  { %v723_v63 = vsel %vm339_vm2, %v709_v21, %v722_v30  ;;  %v3420_v21 = vmov 0.0  }
 0x2c5   :  { %v694_v38 = vpop.permute.xlu1 %693  ;;  %v724_v58 = vsel %vm341_vm3, %v713_v33, %v723_v63  ;;  %3101 = vmatprep.subr.bf16.mxu1 %v3420_v21  ;;  %3119 = vmatprep.subr.bf16.mxu0 %v3420_v21 }
 0x2c6   :  { %v717_v7 = vrot.slane %v694_v38, %v3570_v0  ;;  %3103 = vmatprep.mubr.msk.bf16.mxu1 %vm3421_vm7, %v3420_v21  ;;  %3121 = vmatprep.mubr.msk.bf16.mxu0 %vm3421_vm7, %v3420_v21 }
 0x2c8   :  { %v725_v60 = vsel %vm343_vm4, %v717_v7, %v724_v58 }
 0x2c9   :  { %v726_v3 = vsel %vm345_vm5, %v721_v14, %v725_v60 }
 0x2ca   :  { %v728_v4 = vsel %vm348_vm6, %v726_v3, 0.0 }
 0x2cb   :  { %729 = vadd.xlane.f32.xlu0 %v728_v4 }
 0x343   :  { %v457_v6 = vpop.xlane.xlu1 %456 }
 0x344   :  { %3282 = vrcp.f32 %v457_v6 }
 0x351   :  { %v3283_v9 = vpop.eup %3282 }
 0x352   :  { %v467_v10 = vrot.slane %v3283_v9, %v3610_v40  ;;  %v463_v11 = vrot.slane %v3283_v9, %v3607_v39  ;;  %v471_v15 = vrot.slane %v3283_v9, %v3613_v42  ;;  %v475_v62 = vrot.slane %v3283_v9, %v3616_v44 }
 0x353   :  { %v479_v18 = vrot.slane %v3283_v9, %v3622_v57 }
 0x354   :  { %v730_v59 = vpop.xlane.xlu0 %729  ;;  %v491_v2 = vmul.f32 %v3637_v28, %v467_v10  ;;  %v490_v12 = vmul.f32 %v3633_v24, %v463_v11  ;;  %v492_v16 = vmul.f32 %v3643_v31, %v471_v15  ;;  %v493_v17 = vmul.f32 %v3648_v35, %v475_v62 }
 0x355   :  { %3284 = vrcp.f32 %v730_v59  ;;  %v494_v19 = vmul.f32 %v3655_v46, %v479_v18  ;;  %v483_v31 = vrot.slane %v3283_v9, %v3626_v5 }
 0x356   :  { %503 = vperm.xlu1 %3201, %v491_v2   ;;  %498 = vperm.xlu0 %3200, %v490_v12  }
 0x357   :  { %v495_v25 = vmul.f32 %v3661_v50, %v483_v31 }
 0x35a   :  { %508 = vperm.xlu1 %3201, %v492_v16   ;;  %513 = vperm.xlu0 %3200, %v493_v17  }
 0x35e   :  { %518 = vperm.xlu1 %3201, %v494_v19  }
 0x362   :  { %v3285_v28 = vpop.eup %3284 }
 0x363   :  { %v740_v24 = vrot.slane %v3285_v28, %v3610_v40  ;;  %v736_v20 = vrot.slane %v3285_v28, %v3607_v39  ;;  %v744_v35 = vrot.slane %v3285_v28, %v3613_v42  ;;  %v752_v27 = vrot.slane %v3285_v28, %v3622_v57 }
 0x364   :  { %v748_v8 = vrot.slane %v3285_v28, %v3616_v44  ;;  %v756_v13 = vrot.slane %v3285_v28, %v3626_v5 }
 0x365   :  { %v764_v1 = vmul.f32 %v3667_v51, %v740_v24  ;;  %v763_v23 = vmul.f32 %v3664_v22, %v736_v20  ;;  %v765_v46 = vmul.f32 %v3670_v54, %v744_v35  ;;  %v767_v51 = vmul.f32 %v3673_v55, %v752_v27 }
 0x366   :  { %v766_v22 = vmul.f32 %v3651_v36, %v748_v8  ;;  %v768_v42 = vmul.f32 %v3658_v47, %v756_v13 }
 0x367   :  { %776 = vperm.xlu1 %3201, %v764_v1   ;;  %771 = vperm.xlu0 %3200, %v763_v23  }
 0x36b   :  { %523 = vperm.xlu1 %3201, %v495_v25   ;;  %781 = vperm.xlu0 %3200, %v765_v46  }
 0x36f   :  { %791 = vperm.xlu1 %3201, %v767_v51   ;;  %786 = vperm.xlu0 %3200, %v766_v22  }
 0x373   :  { %796 = vperm.xlu0 %3200, %v768_v42  }
 0x3d1   :  { %v504_v44 = vpop.permute.xlu1 %503  ;;  %v499_v57 = vpop.permute.xlu0 %498 }
 0x3d2   :  { %v527_v5 = vmul.f32 %v3537_v37, %v504_v44  ;;  %v526_v36 = vmul.f32 %v3532_v29, %v499_v57 }
 0x3d4   :  { %v538_v50 = vrot.slane %v527_v5, 4  ;;  %v532_v54 = vrot.slane %v526_v36, 4 }
 0x3d5   :  { %v509_v55 = vpop.permute.xlu1 %508  ;;  %v514_v30 = vpop.permute.xlu0 %513 }
 0x3d6   :  { %v539_v32 = vadd.f32 %v538_v50, %v527_v5  ;;  %v533_v47 = vadd.f32 %v532_v54, %v526_v36  ;;  %v528_v63 = vmul.f32 %v3529_v26, %v509_v55  ;;  %v529_v33 = vmul.f32 %v3540_v41, %v514_v30 }
 0x3d8   :  { %v540_v38 = vrot.slane %v539_v32, 2  ;;  %v534_v7 = vrot.slane %v533_v47, 2  ;;  %v544_v14 = vrot.slane %v528_v63, 4  ;;  %v550_v58 = vrot.slane %v529_v33, 4 }
 0x3d9   :  { %v519_v60 = vpop.permute.xlu1 %518 }
 0x3da   :  { %v541_v3 = vadd.f32 %v540_v38, %v539_v32  ;;  %v535_v4 = vadd.f32 %v534_v7, %v533_v47  ;;  %v545_v37 = vadd.f32 %v544_v14, %v528_v63  ;;  %v551_v6 = vadd.f32 %v550_v58, %v529_v33 }
 0x3db   :  { %v530_v29 = vmul.f32 %v3546_v45, %v519_v60 }
 0x3dc   :  { %v542_v9 = vrot.slane %v541_v3, 1  ;;  %v536_v10 = vrot.slane %v535_v4, 1  ;;  %v546_v11 = vrot.slane %v545_v37, 2  ;;  %v552_v59 = vrot.slane %v551_v6, 2 }
 0x3dd   :  { %v556_v2 = vrot.slane %v530_v29, 4 }
 0x3de   :  { %v543_v12 = vadd.f32 %v542_v9, %v541_v3  ;;  %v537_v26 = vadd.f32 %v536_v10, %v535_v4  ;;  %v547_v15 = vadd.f32 %v546_v11, %v545_v37  ;;  %v553_v18 = vadd.f32 %v552_v59, %v551_v6 }
 0x3df   :  { %v557_v41 = vadd.f32 %v556_v2, %v530_v29 }
 0x3e0   :  { %v848_v62 = vpack.c.bf16 %v543_v12, %v543_v12  ;;  %v847_v16 = vpack.c.bf16 %v537_v26, %v537_v26  ;;  %v548_v17 = vrot.slane %v547_v15, 1  ;;  %v1149_v28 = vsel %vm337_vm1, %v543_v12, %v537_v26 }
 0x3e1   :  { %v558_v19 = vrot.slane %v557_v41, 2  ;;  %v554_v27 = vrot.slane %v553_v18, 1 }
 0x3e2   :  { %v867_v24 = vunpack.c.l.b16 %v848_v62  ;;  %v866_v20 = vunpack.c.l.b16 %v847_v16  ;;  %v549_v1 = vadd.f32 %v548_v17, %v547_v15  ;;  %v777_v45 = vpop.permute.xlu1 %776  ;;  %v772_v23 = vpop.permute.xlu0 %771 }
 0x3e3   :  { %v559_v31 = vadd.f32 %v558_v19, %v557_v41  ;;  %v800_v35 = vmul.f32 %v3543_v43, %v777_v45  ;;  %v799_v25 = vmul.f32 %v3535_v34, %v772_v23  ;;  %v555_v55 = vadd.f32 %v554_v27, %v553_v18 }
 0x3e4   :  { %v849_v46 = vpack.c.bf16 %v549_v1, %v549_v1  ;;  %v3739_v8 = vsel %vm339_vm2, %v549_v1, %v1149_v28  ;;  %v869_v5 = vsel %vm337_vm1, %v867_v24, %v866_v20 }
 0x3e5   :  { %v560_v51 = vrot.slane %v559_v31, 1  ;;  %v811_v22 = vrot.slane %v800_v35, 4  ;;  %v805_v13 = vrot.slane %v799_v25, 4  ;;  %v850_v6 = vpack.c.bf16 %v555_v55, %v555_v55 }
 0x3e6   :  { %v524_v42 = vpop.permute.xlu1 %523  ;;  %v782_v44 = vpop.permute.xlu0 %781  ;;  %v868_v57 = vunpack.c.l.b16 %v849_v46 }
 0x3e7   :  { %v561_v36 = vadd.f32 %v560_v51, %v559_v31  ;;  %v812_v50 = vadd.f32 %v811_v22, %v800_v35  ;;  %v806_v54 = vadd.f32 %v805_v13, %v799_v25  ;;  %v531_v43 = vmul.f32 %v3552_v49, %v524_v42 }
 0x3e8   :  { %v801_v34 = vmul.f32 %v3550_v48, %v782_v44  ;;  %v870_v30 = vsel %vm339_vm2, %v868_v57, %v869_v5  ;;  %v926_v31 = vunpack.c.l.b16 %v850_v6 }
 0x3e9   :  { %v813_v32 = vrot.slane %v812_v50, 2  ;;  %v807_v47 = vrot.slane %v806_v54, 2  ;;  %v562_v63 = vrot.slane %v531_v43, 4  ;;  %v3745_v14 = vpack.c.b16 %v870_v30, %v870_v30 }
 0x3ea   :  { %v817_v33 = vrot.slane %v801_v34, 4  ;;  %v792_v38 = vpop.permute.xlu1 %791  ;;  %v787_v7 = vpop.permute.xlu0 %786  ;;  %v1151_v58 = vsel %vm337_vm1, %v561_v36, %v555_v55  ;;  %v851_v11 = vpack.c.bf16 %v561_v36, %v561_v36 }
 0x3eb   :  { %v814_v60 = vadd.f32 %v813_v32, %v812_v50  ;;  %v808_v3 = vadd.f32 %v807_v47, %v806_v54  ;;  %v563_v4 = vadd.f32 %v562_v63, %v531_v43  ;;  %v803_v49 = vmul.f32 %v3556_v52, %v792_v38  ;;  %3102 = vmatpush3.bf16.xpose.msra.mxu1 %v3745_v14 }
 0x3ec   :  { %v818_v37 = vadd.f32 %v817_v33, %v801_v34  ;;  %v802_v48 = vmul.f32 %v3558_v53, %v787_v7  ;;  %3107 = vmatprep.subr.bf16.mxu1 %v3420_v21  ;;  %v927_v35 = vunpack.c.l.b16 %v851_v11 }
 0x3ed   :  { %v815_v29 = vrot.slane %v814_v60, 1  ;;  %v809_v9 = vrot.slane %v808_v3, 1  ;;  %v564_v10 = vrot.slane %v563_v4, 2  ;;  %v829_v2 = vrot.slane %v803_v49, 4 }
 0x3ee   :  { %v819_v59 = vrot.slane %v818_v37, 2  ;;  %v823_v12 = vrot.slane %v802_v48, 4  ;;  %v797_v26 = vpop.permute.xlu0 %796  ;;  %v929_v47 = vsel %vm337_vm1, %v927_v35, %v926_v31 }
 0x3ef   :  { %v816_v15 = vadd.f32 %v815_v29, %v814_v60  ;;  %v810_v41 = vadd.f32 %v809_v9, %v808_v3  ;;  %v565_v62 = vadd.f32 %v564_v10, %v563_v4  ;;  %v804_v52 = vmul.f32 %v3562_v56, %v797_v26 }
 0x3f0   :  { %v820_v16 = vadd.f32 %v819_v59, %v818_v37  ;;  %v830_v53 = vadd.f32 %v829_v2, %v803_v49  ;;  %v824_v17 = vadd.f32 %v823_v12, %v802_v48  ;;  %v3422_v59 = vmov 65535  }
 0x3f1   :  { %v842_v18 = vpack.c.bf16 %v816_v15, %v816_v15  ;;  %v841_v19 = vpack.c.bf16 %v810_v41, %v810_v41  ;;  %v566_v28 = vrot.slane %v565_v62, 1  ;;  %v835_v24 = vrot.slane %v804_v52, 4 }
 0x3f2   :  { %v821_v20 = vrot.slane %v820_v16, 1  ;;  %v831_v1 = vrot.slane %v830_v53, 2  ;;  %v825_v45 = vrot.slane %v824_v17, 2  ;;  %v1697_v23 = vsel %vm337_vm1, %v816_v15, %v810_v41 }
 0x3f3   :  { %v567_v25 = vadd.f32 %v566_v28, %v565_v62  ;;  %v836_v46 = vadd.f32 %v835_v24, %v804_v52  ;;  %v857_v27 = vunpack.c.l.b16 %v842_v18  ;;  %v856_v13 = vunpack.c.l.b16 %v841_v19 }
 0x3f4   :  { %v822_v51 = vadd.f32 %v821_v20, %v820_v16  ;;  %v832_v22 = vadd.f32 %v831_v1, %v830_v53  ;;  %v826_v56 = vadd.f32 %v825_v45, %v824_v17  ;;  %v1036_v2 = vsel %vm1034_vm8, 4294967295, %v3422_v59 }
 0x3f5   :  { %v852_v42 = vpack.c.bf16 %v567_v25, %v567_v25  ;;  %v837_v44 = vrot.slane %v836_v46, 2  ;;  %v3755_v57 = vsel %vm339_vm2, %v567_v25, %v1151_v58  ;;  %v859_v33 = vsel %vm337_vm1, %v857_v27, %v856_v13 }
 0x3f6   :  { %v843_v5 = vpack.c.bf16 %v822_v51, %v822_v51  ;;  %v833_v36 = vrot.slane %v832_v22, 1  ;;  %v827_v50 = vrot.slane %v826_v56, 1  ;;  %v3758_v54 = vsel %vm339_vm2, %v822_v51, %v1697_v23 }
 0x3f7   :  { %v928_v43 = vunpack.c.l.b16 %v852_v42  ;;  %v838_v55 = vadd.f32 %v837_v44, %v836_v46  ;;  %v3782_v15 = vsel %vm1035_vm9, %v1036_v2, 0 }
 0x3f8   :  { %v834_v34 = vadd.f32 %v833_v36, %v832_v22  ;;  %v828_v30 = vadd.f32 %v827_v50, %v826_v56  ;;  %v858_v32 = vunpack.c.l.b16 %v843_v5 }
 0x3f9   :  { %v839_v63 = vrot.slane %v838_v55, 1  ;;  %v930_v38 = vsel %vm339_vm2, %v928_v43, %v929_v47 }
 0x3fa   :  { %v845_v7 = vpack.c.bf16 %v834_v34, %v834_v34  ;;  %v844_v58 = vpack.c.bf16 %v828_v30, %v828_v30  ;;  %v860_v60 = vsel %vm339_vm2, %v858_v32, %v859_v33  ;;  %v3764_v3 = vpack.c.b16 %v930_v38, %v930_v38 }
 0x3fb   :  { %v840_v4 = vadd.f32 %v839_v63, %v838_v55  ;;  %v3766_v37 = vpack.c.b16 %v860_v60, %v860_v60  ;;  %v1699_v49 = vsel %vm337_vm1, %v834_v34, %v828_v30 }
 0x3fc   :  { %v917_v48 = vunpack.c.l.b16 %v845_v7  ;;  %v916_v6 = vunpack.c.l.b16 %v844_v58 }
 0x3fd   :  { %v846_v29 = vpack.c.bf16 %v840_v4, %v840_v4  ;;  %3104 = vmatmul.mubr.bf16.vlgmr.msra.gmra.mxu1 %v3766_v37  ;;  %v3771_v9 = vsel %vm339_vm2, %v840_v4, %v1699_v49  ;;  %v1039_v41 = vand.u32 %v3782_v15, %v3766_v37 }
 0x3fe   :  { %3108 = vmatpush3.bf16.xpose.msra.mxu1 %v3764_v3  ;;  %3109 = vmatprep.mubr.msk.bf16.mxu1 %vm3421_vm7, %v3420_v21  ;;  %v919_v11 = vsel %vm337_vm1, %v917_v48, %v916_v6 }
 0x3ff   :  { %v918_v10 = vunpack.c.l.b16 %v846_v29  ;;  %3113 = vmatprep.subr.bf16.mxu1 %v3420_v21 }
 0x401   :  { %v920_v12 = vsel %vm339_vm2, %v918_v10, %v919_v11  ;;  %v3796_v11 = vld [vmem:[#allocation2 + $0x78] sm:$0xff]  }
 0x402   :  { %v3779_v26 = vpack.c.b16 %v920_v12, %v920_v12 }
 0x404   :  { %v1101_v62 = vand.u32 %v3782_v15, %v3779_v26 }
 0x405   :  { %3110 = vmatmul.mubr.bf16.vlgmr.msra.gmra.mxu1 %v3779_v26 }
 0x406   :  { %3114 = vmatpush3.bf16.msra.mxu1 %v1039_v41  ;;  %3120 = vmatpush3.bf16.msra.mxu0 %v1101_v62  ;;  %v3799_v62 = vld [vmem:[#allocation2 + $0x38] sm:$0xff]  }
 0x407   :  { %3115 = vmatprep.mubr.msk.bf16.mxu1 %vm3421_vm7, %v3420_v21  ;;  %3125 = vmatprep.subr.bf16.mxu0 %v3420_v21 }
 0x408   :  { %2993 = vmatprep.subr.bf16.mxu1 %v3796_v11 }
 0x4bd   :  { %v907_v52 = vpop.f32.mrf.mxu1 }
 0x4be   :  { %v974_v16 = vsel %vm973_vm10, %v907_v52, -inf }
 0x4bf   :  { %v975_v53 = vrot.slane %v974_v16, 4  ;;  %v3105_v17 = vpop.f32.mrf.mxu1 }
 0x4c1   :  { %v976_v18 = vmax.f32 %v974_v16, %v975_v53  ;;  %v910_v19 = vpop.f32.mrf.mxu1  ;;  %v3805_v53 = vld [vmem:[#allocation2 + $0x30] sm:$0xff]  }
 0x4c2   :  { %v3827_v19 = vld [vmem:[#allocation2 + $0x28] sm:$0xff]  }
 0x4c3   :  { %v977_v28 = vrot.slane %v976_v18, 2  ;;  %v3106_v24 = vpop.f32.mrf.mxu1 }
 0x4c4   :  { %v3839_v24 = vld [vmem:[#allocation2 + $0x18] sm:$0xff]  }
 0x4c5   :  { %v978_v20 = vmax.f32 %v976_v18, %v977_v28  ;;  %v967_v1 = vpop.f32.mrf.mxu1  ;;  %v1587_v18 = vand.u32 %v3782_v15, %v3745_v14  ;;  %v3833_v28 = vld [vmem:[#allocation2 + $0x20] sm:$0xff]  }
 0x4c6   :  { %v981_v45 = vsel %vm973_vm10, %v967_v1, -inf }
 0x4c7   :  { %v979_v23 = vrot.slane %v978_v20, 1  ;;  %v982_v31 = vrot.slane %v981_v45, 4  ;;  %v3111_v35 = vpop.f32.mrf.mxu1 }
 0x4c8   :  { %v3857_v35 = vld [vmem:[#allocation2] sm:$0xff]  }
 0x4c9   :  { %v980_v25 = vmax.f32 %v978_v20, %v979_v23  ;;  %v983_v46 = vmax.f32 %v981_v45, %v982_v31  ;;  %v970_v27 = vpop.f32.mrf.mxu1  ;;  %v3843_v20 = vld [vmem:[#allocation2 + $0x50] sm:$0xff]   ;;  %v3849_v45 = vld [vmem:[#allocation2 + $0x48] sm:$0xff]   ;;  %v3855_v31 = vld [vmem:[#allocation2 + $0x40] sm:$0xff]  }
 0x4ca   :  { %v3851_v23 = vld [vmem:[#allocation2 + $0x8] sm:$0xff]  }
 0x4cb   :  { %v988_v51 = vsub.f32 %v907_v52, %v980_v25  ;;  %v984_v22 = vrot.slane %v983_v46, 2  ;;  %v3112_v56 = vpop.f32.mrf.mxu1  ;;  %v3801_v52 = vld [vmem:[#allocation2 + $0x70] sm:$0xff]   ;;  %v3423_v25 = vmov 1966171168  }
 0x4cd   :  { %v990_v13 = vmul.f32 1.442695, %v988_v51  ;;  %v985_v42 = vmax.f32 %v983_v46, %v984_v22  ;;  %v1165_v46 = vunpack.c.l.s4 %v3423_v25 }
 0x4cf   :  { %3286 = vpow2.f32 %v990_v13  ;;  %v986_v44 = vrot.slane %v985_v42, 1  ;;  %v1166_v27 = vunpack.c.0.s8 %v1165_v46 }
 0x4d1   :  { %v987_v5 = vmax.f32 %v985_v42, %v986_v44  ;;  %v3863_v22 = vsub.s32 %v1166_v27, %v3565_v61 }
 0x4d3   :  { %v989_v36 = vsub.f32 %v967_v1, %v987_v5  ;;  %v3845_v1 = vld [vmem:[#allocation2 + $0x10] sm:$0xff]  }
 0x4d5   :  { %v992_v50 = vmul.f32 1.442695, %v989_v36 }
 0x4d7   :  { %3288 = vpow2.f32 %v992_v50 }
 0x4dc   :  { %v3287_v43 = vpop.eup %3286 }
 0x4dd   :  { %v994_v55 = vsel %vm973_vm10, %v3287_v43, 0.0 }
 0x4de   :  { %v995_v34 = vrot.slane %v994_v55, 4 }
 0x4e0   :  { %v996_v30 = vadd.f32 %v995_v34, %v994_v55 }
 0x4e2   :  { %v997_v32 = vrot.slane %v996_v30, 2 }
 0x4e4   :  { %v3289_v47 = vpop.eup %3288  ;;  %v998_v63 = vadd.f32 %v997_v32, %v996_v30 }
 0x4e5   :  { %v1001_v33 = vsel %vm973_vm10, %v3289_v47, 0.0 }
 0x4e6   :  { %v1002_v38 = vrot.slane %v1001_v33, 4  ;;  %v999_v7 = vrot.slane %v998_v63, 1 }
 0x4e8   :  { %v1003_v58 = vadd.f32 %v1002_v38, %v1001_v33  ;;  %v1000_v60 = vadd.f32 %v999_v7, %v998_v63 }
 0x4ea   :  { %v1004_v4 = vrot.slane %v1003_v58, 2  ;;  %3290 = vrcp.f32 %v1000_v60 }
 0x4ec   :  { %v1005_v49 = vadd.f32 %v1004_v4, %v1003_v58 }
 0x4ee   :  { %v1006_v48 = vrot.slane %v1005_v49, 1 }
 0x4f0   :  { %v1007_v6 = vadd.f32 %v1006_v48, %v1005_v49 }
 0x4f2   :  { %3292 = vrcp.f32 %v1007_v6 }
 0x4f7   :  { %v3291_v29 = vpop.eup %3290 }
 0x4f8   :  { %v1010_v10 = vmul.f32 %v3291_v29, %v3287_v43 }
 0x4fa   :  { %v1012_v59 = vpack.c.bf16 %v1010_v10, %v1010_v10 }
 0x4fc   :  { %1014 = vxpose.xlu0.c.b16.start.end [1/1] (short) (narrow) %v1012_v59, 16 }
 0x4ff   :  { %v3293_v2 = vpop.eup %3292 }
 0x500   :  { %v1011_v12 = vmul.f32 %v3293_v2, %v3289_v47 }
 0x502   :  { %v1013_v41 = vpack.c.bf16 %v1011_v12, %v1011_v12 }
 0x504   :  { %1081 = vxpose.xlu1.c.b16.start.end [1/1] (short) (narrow) %v1013_v41, 16 }
 0x55e   :  { %v1022_v16 = vpop.trf.xlu0 }
 0x55f   :  { %3116 = vmatmul.mubr.msk.bf16.vlgmr.msra.gmra.mxu1 %vm1030_vm11, %v1022_v16 }
 0x560   :  { %2994 = vmatpush3.bf16.msra.mxu1 %v3799_v62 }
 0x561   :  { %2995 = vmatprep.subr.bf16.mxu1 %v3801_v52 }
 0x564   :  { %2996 = vmatpush3.bf16.msra.mxu1 %v3805_v53 }
 0x566   :  { %v1089_v17 = vpop.trf.xlu1 }
 0x567   :  { %3122 = vmatmul.mubr.msk.bf16.vlgmr.msra.gmra.mxu0 %vm1030_vm11, %v1089_v17 }
 0x568   :  { %3126 = vmatpush3.bf16.xpose.msra.mxu0 %v3766_v37  ;;  %3127 = vmatprep.mubr.msk.bf16.mxu0 %vm3421_vm7, %v3420_v21  ;;  %v3825_v37 = vld [vmem:[#allocation2 + $0x68] sm:$0xff]  }
 0x569   :  { %3131 = vmatprep.subr.bf16.mxu0 %v3420_v21  ;;  %2997 = vmatprep.subr.bf16.mxu1 %v3825_v37 }
 0x56a   :  { %2998 = vmatpush3.bf16.msra.mxu1 %v3827_v19 }
 0x56f   :  { %3128 = vmatmul.mubr.bf16.vlgmr.msra.gmra.mxu0 %v3745_v14  ;;  %v3837_v14 = vld [vmem:[#allocation2 + $0x58] sm:$0xff]  }
 0x570   :  { %3132 = vmatpush3.bf16.xpose.msra.mxu0 %v3779_v26  ;;  %3133 = vmatprep.mubr.msk.bf16.mxu0 %vm3421_vm7, %v3420_v21  ;;  %v3831_v26 = vld [vmem:[#allocation2 + $0x60] sm:$0xff]  }
 0x571   :  { %3137 = vmatprep.subr.bf16.mxu0 %v3420_v21  ;;  %2999 = vmatprep.subr.bf16.mxu1 %v3831_v26 }
 0x572   :  { %3000 = vmatpush3.bf16.msra.mxu1 %v3833_v28 }
 0x573   :  { %3001 = vmatprep.subr.bf16.mxu1 %v3837_v14 }
 0x576   :  { %3002 = vmatpush3.bf16.msra.mxu1 %v3839_v24 }
 0x577   :  { %3134 = vmatmul.mubr.bf16.vlgmr.msra.gmra.mxu0 %v3764_v3  ;;  %3003 = vmatprep.subr.bf16.mxu1 %v3843_v20 }
 0x578   :  { %3138 = vmatpush3.bf16.msra.mxu0 %v1587_v18  ;;  %3139 = vmatprep.mubr.msk.bf16.mxu0 %vm3421_vm7, %v3420_v21 }
 0x579   :  { %3143 = vmatprep.subr.bf16.mxu0 %v3420_v21 }
 0x57a   :  { %3004 = vmatpush3.bf16.msra.mxu1 %v3845_v1 }
 0x57b   :  { %3005 = vmatprep.subr.bf16.mxu1 %v3849_v45 }
 0x57e   :  { %3006 = vmatpush3.bf16.msra.mxu1 %v3851_v23 }
 0x57f   :  { %3007 = vmatprep.subr.bf16.mxu1 %v3855_v31 }
 0x582   :  { %3008 = vmatpush3.bf16.msra.mxu1 %v3857_v35 }
 0x583   :  { %3023 = vmatprep.subr.bf16.mxu1 %v3796_v11 }
 0x61f   :  { %v1075_v51 = vpop.f32.mrf.mxu1 }
 0x620   :  { %v2938_v56 = vpack.c.bf16 %v1075_v51, %v3739_v8 }
 0x621   :  { %v3117_v13 = vpop.f32.mrf.mxu1 }
 0x622   :  { %v1170_v44 = vrot.slane %v2938_v56, %v3863_v22 }
 0x623   :  { %v1078_v42 = vpop.f32.mrf.mxu1 }
 0x624   :  { %v1171_v50 = vcombine.high %v1170_v44, %v1170_v44  ;;  %v1178_v8 = vrot.slane %v1170_v44, %v3863_v22 }
 0x625   :  { %v3118_v5 = vpop.f32.mrf.mxu1 }
 0x626   :  { %v1185_v32 = vrot.slane %v1171_v50, %v3863_v22 }
 0x627   :  { %v1137_v36 = vpop.f32.mrf.mxu0 }
 0x628   :  { %v2939_v43 = vpack.c.bf16 %v1137_v36, %v3755_v57 }
 0x629   :  { %v3123_v55 = vpop.f32.mrf.mxu0 }
 0x62a   :  { %v1193_v34 = vrot.slane %v2939_v43, %v3863_v22 }
 0x62b   :  { %v1140_v30 = vpop.f32.mrf.mxu0 }
 0x62c   :  { %v1194_v47 = vcombine.high %v1193_v34, %v1193_v34  ;;  %v1201_v61 = vrot.slane %v1193_v34, %v3863_v22 }
 0x62d   :  { %v3124_v63 = vpop.f32.mrf.mxu0 }
 0x62e   :  { %v1208_v33 = vrot.slane %v1194_v47, %v3863_v22  ;;  %v1213_v38 = vunpack.i.h.s16 %v1201_v61  ;;  %v2941_v7 = vpack.i.b16 %v1201_v61, %v1185_v32 }
 0x62f   :  { %v1481_v58 = vpop.f32.mrf.mxu0 }
 0x630   :  { %v2942_v60 = vpack.i.b16 %v1208_v33, %v1213_v38  ;;  %v1224_v4 = vcombine.low %v1178_v8, %v2941_v7  ;;  %v1527_v57 = vsel %vm973_vm10, %v1481_v58, -inf }
 0x631   :  { %v1528_v49 = vrot.slane %v1527_v57, 4  ;;  %v3129_v48 = vpop.f32.mrf.mxu0 }
 0x632   :  { %v1231_v6 = vrot.slane %v1224_v4, %v3863_v22  ;;  %v1238_v29 = vrot.slane %v2942_v60, %v3863_v22 }
 0x633   :  { %v1529_v10 = vmax.f32 %v1527_v57, %v1528_v49  ;;  %v1484_v59 = vpop.f32.mrf.mxu0 }
 0x634   :  { %v1240_v2 = vcombine.high %v1231_v6, %v1238_v29  ;;  %v1239_v12 = vcombine.low %v1231_v6, %v1238_v29 }
 0x635   :  { %v1530_v41 = vrot.slane %v1529_v10, 2  ;;  %v3130_v16 = vpop.f32.mrf.mxu0 }
 0x636   :  { %v1254_v17 = vrot.slane %v1240_v2, %v3863_v22  ;;  %v1247_v18 = vrot.slane %v1239_v12, %v3863_v22 }
 0x637   :  { %v1531_v25 = vmax.f32 %v1529_v10, %v1530_v41  ;;  %v1521_v46 = vpop.f32.mrf.mxu0 }
 0x638   :  { %v1534_v27 = vsel %vm973_vm10, %v1521_v46, -inf  ;;  %1385 = vmatprep.mubr.bf16.mxu1 %v1254_v17 }
 0x639   :  { %v1532_v51 = vrot.slane %v1531_v25, 1  ;;  %v1535_v56 = vrot.slane %v1534_v27, 4  ;;  %1386 = vmatmul.mubr.bf16.vlgmr.msra.gmra.mxu1 %v1247_v18  ;;  %v3135_v13 = vpop.f32.mrf.mxu0 }
 0x63a   :  { %3024 = vmatpush3.bf16.msra.mxu1 %v3799_v62  ;;  %v3929_v13 = vld [vmem:[%s4217_s4 + $0x20] sm:$0xff]  }
 0x63b   :  { %v1533_v42 = vmax.f32 %v1531_v25, %v1532_v51  ;;  %v1536_v44 = vmax.f32 %v1534_v27, %v1535_v56  ;;  %v1524_v5 = vpop.f32.mrf.mxu0  ;;  %3025 = vmatprep.subr.bf16.mxu1 %v3801_v52  ;;  %v1649_v27 = vand.u32 %v3782_v15, %v3764_v3  ;;  %v3906_v51 = vld [vmem:[%s4217_s4 + $0x38] sm:$0xff]   ;;  %v3913_v3 = vld [vmem:[%s4217_s4 + $0x30] sm:$0xff]   ;;  %v3922_v15 = vld [vmem:[%s4217_s4 + $0x28] sm:$0xff]  }
 0x63c   :  { %v3950_v5 = vld [vmem:[%s4217_s4 + $0x8] sm:$0xff]  }
 0x63d   :  { %v1541_v36 = vsub.f32 %v1481_v58, %v1533_v42  ;;  %v1537_v50 = vrot.slane %v1536_v44, 2  ;;  %v3136_v43 = vpop.f32.mrf.mxu0  ;;  %v3936_v42 = vld [vmem:[%s4217_s4 + $0x18] sm:$0xff]  }
 0x63e   :  { %3026 = vmatpush3.bf16.msra.mxu1 %v3805_v53  ;;  %v3965_v43 = vld [vmem:[%s4221_s8] ss:$0 sm:$0xff] }
 0x63f   :  { %v1543_v55 = vmul.f32 1.442695, %v1541_v36  ;;  %v1538_v34 = vmax.f32 %v1536_v44, %v1537_v50  ;;  %3027 = vmatprep.subr.bf16.mxu1 %v3825_v37  ;;  %v3943_v44 = vld [vmem:[%s4217_s4 + $0x10] sm:$0xff]   ;;  %v3957_v36 = vld [vmem:[%s4217_s4] sm:$0xff]  }
 0x641   :  { %3294 = vpow2.f32 %v1543_v55  ;;  %v1539_v30 = vrot.slane %v1538_v34, 1 }
 0x642   :  { %3028 = vmatpush3.bf16.msra.mxu1 %v3827_v19 }
 0x643   :  { %v1540_v32 = vmax.f32 %v1538_v34, %v1539_v30  ;;  %3029 = vmatprep.subr.bf16.mxu1 %v3831_v26 }
 0x645   :  { %v1542_v47 = vsub.f32 %v1521_v46, %v1540_v32 }
 0x646   :  { %3030 = vmatpush3.bf16.msra.mxu1 %v3833_v28 }
 0x647   :  { %v1545_v61 = vmul.f32 1.442695, %v1542_v47  ;;  %3031 = vmatprep.subr.bf16.mxu1 %v3837_v14 }
 0x649   :  { %3296 = vpow2.f32 %v1545_v61 }
 0x64a   :  { %3032 = vmatpush3.bf16.msra.mxu1 %v3839_v24 }
 0x64b   :  { %3033 = vmatprep.subr.bf16.mxu1 %v3843_v20 }
 0x64e   :  { %v3295_v63 = vpop.eup %3294  ;;  %3034 = vmatpush3.bf16.msra.mxu1 %v3845_v1 }
 0x64f   :  { %v1547_v8 = vsel %vm973_vm10, %v3295_v63, 0.0  ;;  %3035 = vmatprep.subr.bf16.mxu1 %v3849_v45 }
 0x650   :  { %v1548_v33 = vrot.slane %v1547_v8, 4 }
 0x652   :  { %v1549_v38 = vadd.f32 %v1548_v33, %v1547_v8  ;;  %3036 = vmatpush3.bf16.msra.mxu1 %v3851_v23 }
 0x653   :  { %3037 = vmatprep.subr.bf16.mxu1 %v3855_v31 }
 0x654   :  { %v1550_v7 = vrot.slane %v1549_v38, 2 }
 0x656   :  { %v3297_v58 = vpop.eup %3296  ;;  %v1551_v60 = vadd.f32 %v1550_v7, %v1549_v38  ;;  %3038 = vmatpush3.bf16.msra.mxu1 %v3857_v35 }
 0x657   :  { %v1554_v4 = vsel %vm973_vm10, %v3297_v58, 0.0  ;;  %3169 = vmatprep.subr.bf16.mxu1 %v3420_v21 }
 0x658   :  { %v1555_v57 = vrot.slane %v1554_v4, 4  ;;  %v1552_v49 = vrot.slane %v1551_v60, 1 }
 0x65a   :  { %v1556_v48 = vadd.f32 %v1555_v57, %v1554_v4  ;;  %v1553_v6 = vadd.f32 %v1552_v49, %v1551_v60 }
 0x65c   :  { %v1557_v29 = vrot.slane %v1556_v48, 2  ;;  %3298 = vrcp.f32 %v1553_v6 }
 0x65e   :  { %v1558_v10 = vadd.f32 %v1557_v29, %v1556_v48  ;;  %v2965_v48 = vld [vmem:[%s4218_s5] ss:$0 sm:$0xff] }
 0x660   :  { %v1559_v59 = vrot.slane %v1558_v10, 1 }
 0x662   :  { %v1560_v2 = vadd.f32 %v1559_v59, %v1558_v10 }
 0x664   :  { %3300 = vrcp.f32 %v1560_v2 }
 0x669   :  { %v3299_v12 = vpop.eup %3298 }
 0x66a   :  { %v1563_v41 = vmul.f32 %v3299_v12, %v3295_v63 }
 0x66c   :  { %v1565_v16 = vpack.c.bf16 %v1563_v41, %v1563_v41 }
 0x66e   :  { %1567 = vxpose.xlu0.c.b16.start.end [1/1] (short) (narrow) %v1565_v16, 16 }
 0x671   :  { %v3301_v17 = vpop.eup %3300 }
 0x672   :  { %v1564_v18 = vmul.f32 %v3301_v17, %v3297_v58 }
 0x674   :  { %v1566_v25 = vpack.c.bf16 %v1564_v18, %v1564_v18 }
 0x676   :  { %1629 = vxpose.xlu1.c.b16.start.end [1/1] (short) (narrow) %v1566_v25, 16 }
 0x6d0   :  { %v1575_v46 = vpop.trf.xlu0 }
 0x6d1   :  { %3140 = vmatmul.mubr.msk.bf16.vlgmr.msra.gmra.mxu0 %vm1030_vm11, %v1575_v46 }
 0x6d2   :  { %3144 = vmatpush3.bf16.msra.mxu0 %v1649_v27  ;;  %3145 = vmatprep.mubr.msk.bf16.mxu0 %vm3421_vm7, %v3420_v21 }
 0x6d3   :  { %3149 = vmatprep.subr.bf16.mxu0 %v3420_v21 }
 0x6d8   :  { %v1637_v56 = vpop.trf.xlu1 }
 0x6d9   :  { %3146 = vmatmul.mubr.msk.bf16.vlgmr.msra.gmra.mxu0 %vm1030_vm11, %v1637_v56 }
 0x6da   :  { %3150 = vmatpush3.bf16.msra.mxu0 %v3906_v51  ;;  %3165 = vmatprep.mubr.msk.bf16.mxu0 %vm3421_vm7, %v3420_v21 }
 0x6db   :  { %3151 = vmatprep.subr.bf16.mxu0 %v3420_v21 }
 0x6de   :  { %3152 = vmatpush3.bf16.msra.mxu0 %v3913_v3 }
 0x6df   :  { %3153 = vmatprep.subr.bf16.mxu0 %v3420_v21 }
 0x6e2   :  { %3154 = vmatpush3.bf16.msra.mxu0 %v3922_v15 }
 0x6e3   :  { %3155 = vmatprep.subr.bf16.mxu0 %v3420_v21 }
 0x6e6   :  { %3156 = vmatpush3.bf16.msra.mxu0 %v3929_v13 }
 0x6e7   :  { %3157 = vmatprep.subr.bf16.mxu0 %v3420_v21 }
 0x6ea   :  { %3158 = vmatpush3.bf16.msra.mxu0 %v3936_v42 }
 0x6eb   :  { %3159 = vmatprep.subr.bf16.mxu0 %v3420_v21 }
 0x6ee   :  { %3160 = vmatpush3.bf16.msra.mxu0 %v3943_v44 }
 0x6ef   :  { %3161 = vmatprep.subr.bf16.mxu0 %v3420_v21 }
 0x6f2   :  { %3162 = vmatpush3.bf16.msra.mxu0 %v3950_v5 }
 0x6f3   :  { %3163 = vmatprep.subr.bf16.mxu0 %v3420_v21 }
 0x6f6   :  { %3164 = vmatpush3.bf16.msra.mxu0 %v3957_v36 }
 0x6f7   :  { %3063 = vmatprep.subr.bf16.mxu0 %v3796_v11 }
 0x6f9   :  { %v3009_v50 = vpop.f32.mrf.mxu1 }
 0x6fb   :  { %v3010_v55 = vpop.f32.mrf.mxu1 }
 0x6fc   :  { %v3011_v34 = vadd.f32 %v3010_v55, %v3009_v50 }
 0x6fd   :  { %v3012_v30 = vpop.f32.mrf.mxu1 }
 0x6fe   :  { %v3968_v32 = vadd.f32 %v3011_v34, %v3965_v43 }
 0x6ff   :  { %v3013_v47 = vpop.f32.mrf.mxu1 }
 0x700   :  { %v1887_v61 = vpack.c.bf16 %v3968_v32, %v3968_v32 }
 0x702   :  { %3166 = vmatmul.mubr.bf16.vlgmr.msra.gmra.mxu0 %v1887_v61 }
 0x703   :  { %3064 = vmatpush3.bf16.msra.mxu0 %v3799_v62 }
 0x704   :  { %3065 = vmatprep.subr.bf16.mxu0 %v3801_v52 }
 0x707   :  { %3066 = vmatpush3.bf16.msra.mxu0 %v3805_v53 }
 0x708   :  { %3067 = vmatprep.subr.bf16.mxu0 %v3825_v37 }
 0x70b   :  { %3068 = vmatpush3.bf16.msra.mxu0 %v3827_v19 }
 0x70c   :  { %3069 = vmatprep.subr.bf16.mxu0 %v3831_v26 }
 0x70f   :  { %3070 = vmatpush3.bf16.msra.mxu0 %v3833_v28 }
 0x710   :  { %3071 = vmatprep.subr.bf16.mxu0 %v3837_v14 }
 0x713   :  { %3072 = vmatpush3.bf16.msra.mxu0 %v3839_v24 }
 0x714   :  { %3073 = vmatprep.subr.bf16.mxu0 %v3843_v20 }
 0x717   :  { %3074 = vmatpush3.bf16.msra.mxu0 %v3845_v1 }
 0x718   :  { %3075 = vmatprep.subr.bf16.mxu0 %v3849_v45 }
 0x71b   :  { %3076 = vmatpush3.bf16.msra.mxu0 %v3851_v23 }
 0x71c   :  { %3077 = vmatprep.subr.bf16.mxu0 %v3855_v31 }
 0x71f   :  { %3078 = vmatpush3.bf16.msra.mxu0 %v3857_v35 }
 0x791   :  { %v1623_v11 = vpop.f32.mrf.mxu0 }
 0x792   :  { %v2961_v62 = vpack.c.bf16 %v1623_v11, %v3758_v54 }
 0x793   :  { %v3141_v52 = vpop.f32.mrf.mxu0 }
 0x794   :  { %v1718_v37 = vrot.slane %v2961_v62, %v3863_v22 }
 0x795   :  { %v1626_v53 = vpop.f32.mrf.mxu0 }
 0x796   :  { %v1719_v28 = vcombine.high %v1718_v37, %v1718_v37  ;;  %v1726_v54 = vrot.slane %v1718_v37, %v3863_v22 }
 0x797   :  { %v3142_v19 = vpop.f32.mrf.mxu0 }
 0x798   :  { %v1733_v45 = vrot.slane %v1719_v28, %v3863_v22 }
 0x799   :  { %v1685_v26 = vpop.f32.mrf.mxu0 }
 0x79a   :  { %v2962_v14 = vpack.c.bf16 %v1685_v26, %v3771_v9 }
 0x79b   :  { %v3147_v24 = vpop.f32.mrf.mxu0 }
 0x79c   :  { %v1741_v20 = vrot.slane %v2962_v14, %v3863_v22 }
 0x79d   :  { %v1688_v1 = vpop.f32.mrf.mxu0 }
 0x79e   :  { %v1742_v23 = vcombine.high %v1741_v20, %v1741_v20  ;;  %v1749_v31 = vrot.slane %v1741_v20, %v3863_v22 }
 0x79f   :  { %v3148_v35 = vpop.f32.mrf.mxu0 }
 0x7a0   :  { %v1756_v63 = vrot.slane %v1742_v23, %v3863_v22  ;;  %v1761_v8 = vunpack.i.h.s16 %v1749_v31  ;;  %v2963_v33 = vpack.i.b16 %v1749_v31, %v1733_v45 }
 0x7a2   :  { %v2964_v38 = vpack.i.b16 %v1756_v63, %v1761_v8  ;;  %v1766_v7 = vcombine.low %v1726_v54, %v2963_v33 }
 0x7a4   :  { %v1773_v9 = vrot.slane %v1766_v7, %v3863_v22  ;;  %v1780_v58 = vrot.slane %v2964_v38, %v3863_v22 }
 0x7a6   :  { %v1782_v60 = vcombine.high %v1773_v9, %v1780_v58  ;;  %v1781_v4 = vcombine.low %v1773_v9, %v1780_v58 }
 0x7a8   :  { %v1796_v57 = vrot.slane %v1782_v60, %v3863_v22  ;;  %v1789_v49 = vrot.slane %v1781_v4, %v3863_v22  ;;  %v2974_v4 = vld [vmem:[%s4219_s6] ss:$0 sm:$0xff]  ;;  %s3424_s6 = smov [#allocation6]  }
 0x7a9   :  { %s2892_s22 = sshll.u32 %s3424_s6, 4  ;;  %s2893_s22 = int_to_ptr.vmem [resolvable:$true] %s2892_s22 }
 0x7aa   :  { %1831 = vmatprep.mubr.bf16.mxu1 %v1796_v57  ;;  %s3350_s0 = scalar_lea.vmem %s2893_s22, 32  ;;  %p3355_p6 = scmp.lt.s32.totalorder %s2893_s22, %s2893_s22 }
 0x7ab   :  { %1832 = vmatmul.mubr.bf16.vlgmr.msra.gmra.mxu1 %v1789_v49  ;;  %v2048_v49 = vrot.slane %v2974_v4, %v3863_v22  ;;  %p3351_p5 = scmp.ne.s32.totalorder %s2893_s22, %s3350_s0  ;;  %p3356_p7 = scmp.lt.s32.totalorder %s3350_s0, %s3350_s0 }
 0x7ac   :  { %3170 = vmatpush3.bf16.msra.mxu1 %v3906_v51  ;;  %3185 = vmatprep.mubr.msk.bf16.mxu1 %vm3421_vm7, %v3420_v21 }
 0x7ad   :  { %3171 = vmatprep.subr.bf16.mxu1 %v3420_v21  ;;  %p3357_p8 = por %p3356_p7, %p3355_p6 }
 0x7af   :  { %p3358_p9 = pnand %p3357_p8, %p3351_p5 }
 0x7b0   :  { %3172 = vmatpush3.bf16.msra.mxu1 %v3913_v3 }
 0x7b1   :  { %3173 = vmatprep.subr.bf16.mxu1 %v3420_v21 }
 0x7b4   :  { %3174 = vmatpush3.bf16.msra.mxu1 %v3922_v15 }
 0x7b5   :  { %3175 = vmatprep.subr.bf16.mxu1 %v3420_v21 }
 0x7b8   :  { %3176 = vmatpush3.bf16.msra.mxu1 %v3929_v13 }
 0x7b9   :  { %3177 = vmatprep.subr.bf16.mxu1 %v3420_v21 }
 0x7bc   :  { %3178 = vmatpush3.bf16.msra.mxu1 %v3936_v42 }
 0x7bd   :  { %3179 = vmatprep.subr.bf16.mxu1 %v3420_v21 }
 0x7c0   :  { %3180 = vmatpush3.bf16.msra.mxu1 %v3943_v44 }
 0x7c1   :  { %3181 = vmatprep.subr.bf16.mxu1 %v3420_v21 }
 0x7c2   :  { %v1976_v6 = vpop.f32.mrf.mxu0 }
 0x7c3   :  { %v1977_v29 = vadd.f32 %v2965_v48, %v1976_v6 }
 0x7c4   :  { %v3167_v10 = vpop.f32.mrf.mxu0  ;;  %3182 = vmatpush3.bf16.msra.mxu1 %v3950_v5 }
 0x7c5   :  { %3302 = vtanh.f32 %v1977_v29  ;;  %3183 = vmatprep.subr.bf16.mxu1 %v3420_v21  ;;  %v2049_v29 = vcombine.high %v2048_v49, %v2048_v49 }
 0x7c6   :  { %v1979_v59 = vpop.f32.mrf.mxu0 }
 0x7c7   :  { %v2063_v10 = vrot.slane %v2049_v29, %v3863_v22  ;;  %v2056_v59 = vrot.slane %v2048_v49, %v3863_v22 }
 0x7c8   :  { %v3168_v2 = vpop.f32.mrf.mxu0  ;;  %3184 = vmatpush3.bf16.msra.mxu1 %v3957_v36 }
 0x7d2   :  { %v3303_v12 = vpop.eup %3302 }
 0x7d3   :  { %v1984_v41 = vcombine.high %v3303_v12, %v3303_v12  ;;  %v1991_v16 = vrot.slane %v3303_v12, %v3863_v22 }
 0x7d5   :  { %v1999_v17 = vcombine.high %v1991_v16, %v1991_v16  ;;  %v4021_v18 = vrot.slane %v1991_v16, %v3863_v22  ;;  %v1998_v25 = vrot.slane %v1984_v41, %v3863_v22  ;;  %v2064_v16 = vcombine.high %v2056_v59, %v2056_v59 }
 0x7d7   :  { %v2021_v46 = vrot.slane %v1999_v17, %v3863_v22  ;;  %v4027_v27 = vcombine.high %v4021_v18, %v4021_v18  ;;  %v2000_v21 = vcombine.high %v1998_v25, %v1998_v25  ;;  %v4031_v56 = vrot.slane %v1998_v25, %v3863_v22 }
 0x7d9   :  { %v2173_v51 = vcombine.low %v4021_v18, %v2021_v46  ;;  %v4034_v3 = vrot.slane %v2000_v21, %v3863_v22  ;;  %v2030_v15 = vcombine.high %v2021_v46, %v2021_v46  ;;  %v2187_v42 = vrot.slane %v4027_v27, %v3863_v22 }
 0x7db   :  { %v2180_v13 = vrot.slane %v2173_v51, %v3863_v22  ;;  %v2196_v44 = vcombine.low %v2030_v15, %v4031_v56  ;;  %v2210_v50 = vrot.slane %v4034_v3, %v3863_v22  ;;  %v2068_v51 = vmul.f32 %v2056_v59, %v4021_v18 }
 0x7dc   :  { %v2073_v18 = vmul.f32 %v2064_v16, %v4034_v3 }
 0x7dd   :  { %v4040_v5 = vcombine.low %v2180_v13, %v2187_v42  ;;  %v2203_v36 = vrot.slane %v2196_v44, %v3863_v22  ;;  %v2071_v13 = vmul.f32 %v2056_v59, %v2030_v15 }
 0x7df   :  { %v4045_v55 = vcombine.low %v2203_v36, %v2210_v50 }
 0x86b   :  { %v3039_v34 = vpop.f32.mrf.mxu1 }
 0x86d   :  { %v3040_v30 = vpop.f32.mrf.mxu1 }
 0x86e   :  { %v3041_v47 = vadd.f32 %v3040_v30, %v3039_v34  ;;  %v2070_v30 = vmul.f32 %v2064_v16, %v4027_v27 }
 0x86f   :  { %v3042_v61 = vpop.f32.mrf.mxu1 }
 0x870   :  { %v1834_v11 = vadd.f32 %v3041_v47, %v3965_v43  ;;  %v2094_v3 = vrot.slane %v2070_v30, %v3863_v22 }
 0x871   :  { %v3043_v62 = vpop.f32.mrf.mxu1 }
 0x872   :  { %v1840_v52 = vcombine.high %v1834_v11, %v1834_v11  ;;  %v1847_v53 = vrot.slane %v1834_v11, %v3863_v22  ;;  %v2237_v37 = vpack.c.bf16 %v1834_v11, %v1834_v11 }
 0x874   :  { %v1854_v19 = vrot.slane %v1840_v52, %v3863_v22  ;;  %v1855_v26 = vcombine.high %v1847_v53, %v1847_v53  ;;  %v1863_v28 = vrot.slane %v1847_v53, %v3863_v22  ;;  %3186 = vmatmul.mubr.bf16.vlgmr.msra.gmra.mxu1 %v2237_v37 }
 0x876   :  { %v1856_v14 = vcombine.high %v1854_v19, %v1854_v19  ;;  %v1877_v24 = vrot.slane %v1855_v26, %v3863_v22  ;;  %v1885_v20 = vcombine.high %v1863_v28, %v1863_v28  ;;  %v1870_v1 = vrot.slane %v1854_v19, %v3863_v22 }
 0x878   :  { %v1884_v45 = vrot.slane %v1856_v14, %v3863_v22  ;;  %v1886_v23 = vcombine.high %v1877_v24, %v1877_v24  ;;  %v2824_v31 = vcombine.low %v1863_v28, %v1877_v24  ;;  %v2838_v54 = vrot.slane %v1885_v20, %v3863_v22 }
 0x87a   :  { %v2831_v35 = vrot.slane %v2824_v31, %v3863_v22  ;;  %v2847_v63 = vcombine.low %v1886_v23, %v1870_v1  ;;  %v2861_v33 = vrot.slane %v1884_v45, %v3863_v22 }
 0x87c   :  { %v2854_v8 = vrot.slane %v2847_v63, %v3863_v22  ;;  %v2839_v38 = vcombine.low %v2831_v35, %v2838_v54 }
 0x87e   :  { %v2862_v7 = vcombine.low %v2854_v8, %v2861_v33  ;;  %2975 = vst.sshfl [vmem:[#allocation8] sm:$0x15 pattern:$0x73625140] %v2839_v38 }
 0x880   :  { %2976 = vst.sshfl [vmem:[#allocation8 + $0x4] sm:$0x15 pattern:$0x73625140] %v2862_v7 }
 0x934   :  { %v2272_v9 = vpop.f32.mrf.mxu1 }
 0x935   :  { %v2273_v58 = vadd.f32 %v2965_v48, %v2272_v9  ;;  %v2069_v48 = vmul.f32 %v2063_v10, %v2021_v46  ;;  %v2072_v46 = vmul.f32 %v2063_v10, %v4031_v56  ;;  %v2117_v9 = vrot.slane %v2073_v18, %v3863_v22 }
 0x936   :  { %v3187_v60 = vpop.f32.mrf.mxu1 }
 0x937   :  { %3304 = vtanh.f32 %v2273_v58  ;;  %v2080_v50 = vcombine.low %v2068_v51, %v2069_v48  ;;  %v2103_v15 = vcombine.low %v2071_v13, %v2072_v46 }
 0x938   :  { %v2275_v57 = vpop.f32.mrf.mxu1 }
 0x939   :  { %v2087_v28 = vrot.slane %v2080_v50, %v3863_v22  ;;  %v2110_v54 = vrot.slane %v2103_v15, %v3863_v22 }
 0x93a   :  { %v3188_v6 = vpop.f32.mrf.mxu1 }
 0x93b   :  { %v2095_v8 = vcombine.low %v2087_v28, %v2094_v3  ;;  %v2118_v4 = vcombine.low %v2110_v54, %v2117_v9 }
 0x93d   :  { %v2102_v49 = vrot.slane %v2095_v8, %v3863_v22 }
 0x944   :  { %v3305_v2 = vpop.eup %3304 }
 0x945   :  { %v2280_v12 = vcombine.high %v3305_v2, %v3305_v2  ;;  %v2287_v41 = vrot.slane %v3305_v2, %v3863_v22 }
 0x947   :  { %v2295_v17 = vcombine.high %v2287_v41, %v2287_v41  ;;  %v2303_v25 = vrot.slane %v2287_v41, %v3863_v22  ;;  %v2294_v21 = vrot.slane %v2280_v12, %v3863_v22 }
 0x949   :  { %v2317_v42 = vrot.slane %v2295_v17, %v3863_v22  ;;  %v2325_v44 = vcombine.high %v2303_v25, %v2303_v25  ;;  %v2296_v36 = vcombine.high %v2294_v21, %v2294_v21  ;;  %v2310_v34 = vrot.slane %v2294_v21, %v3863_v22 }
 0x94a   :  { %v2333_v47 = vmul.f32 %v2303_v25, %v2056_v59 }
 0x94b   :  { %v2334_v61 = vmul.f32 %v2317_v42, %v2063_v10  ;;  %v2335_v11 = vmul.f32 %v2325_v44, %v2064_v16  ;;  %v2437_v62 = vcombine.low %v2303_v25, %v2317_v42  ;;  %v2324_v52 = vrot.slane %v2296_v36, %v3863_v22 }
 0x94c   :  { %v2326_v53 = vcombine.high %v2317_v42, %v2317_v42  ;;  %v2451_v26 = vrot.slane %v2325_v44, %v3863_v22  ;;  %v2337_v14 = vmul.f32 %v2310_v34, %v2063_v10  ;;  %v2125_v10 = vrot.slane %v2118_v4, %v3863_v22 }
 0x94d   :  { %v2345_v37 = vcombine.low %v2333_v47, %v2334_v61  ;;  %v2444_v19 = vrot.slane %v2437_v62, %v3863_v22  ;;  %v2338_v56 = vmul.f32 %v2324_v52, %v2064_v16  ;;  %v2359_v1 = vrot.slane %v2335_v11, %v3863_v22 }
 0x94e   :  { %v2336_v27 = vmul.f32 %v2326_v53, %v2056_v59  ;;  %v2460_v24 = vcombine.low %v2326_v53, %v2310_v34  ;;  %v2474_v35 = vrot.slane %v2324_v52, %v3863_v22  ;;  %v2129_v59 = vsel %vm2128_vm12, %v2102_v49, 0.0 }
 0x94f   :  { %v2352_v20 = vrot.slane %v2345_v37, %v3863_v22  ;;  %v4079_v45 = vcombine.low %v2444_v19, %v2451_v26  ;;  %v2382_v38 = vrot.slane %v2338_v56, %v3863_v22  ;;  %v2132_v2 = vsel %vm2128_vm12, %v2125_v10, 0.0 }
 0x950   :  { %v2368_v23 = vcombine.low %v2336_v27, %v2337_v14  ;;  %v2467_v31 = vrot.slane %v2460_v24, %v3863_v22 }
 0x951   :  { %v2360_v63 = vcombine.low %v2352_v20, %v2359_v1 }
 0x952   :  { %v2375_v33 = vrot.slane %v2368_v23, %v3863_v22  ;;  %v4087_v7 = vcombine.low %v2467_v31, %v2474_v35 }
 0x953   :  { %v2367_v58 = vrot.slane %v2360_v63, %v3863_v22 }
 0x954   :  { %v2383_v60 = vcombine.low %v2375_v33, %v2382_v38 }
 0x955   :  { %v2393_v57 = vsel %vm2128_vm12, %v2367_v58, 0.0 }
 0x956   :  { %2394 = vadd.xlane.f32.xlu0 %v2393_v57  ;;  %v2390_v6 = vrot.slane %v2383_v60, %v3863_v22 }
 0x958   :  { %v2396_v29 = vsel %vm2128_vm12, %v2390_v6, 0.0 }
 0x959   :  { %2397 = vadd.xlane.f32.xlu1 %v2396_v29 }
 0x95a   :  { %2130 = vadd.xlane.f32.xlu0 %v2129_v59 }
 0x95d   :  { %2133 = vadd.xlane.f32.xlu1 %v2132_v2 }
 0x9df   :  { %v2395_v12 = vpop.xlane.xlu0 %2394 }
 0x9e0   :  { %v2399_v41 = vsel %vm2128_vm12, %v2395_v12, -inf }
 0x9e1   :  { %v2400_v48 = vrot.slane %v2399_v41, 4 }
 0x9e2   :  { %v2398_v16 = vpop.xlane.xlu1 %2397 }
 0x9e3   :  { %v2401_v17 = vmax.f32 %v2399_v41, %v2400_v48  ;;  %v2406_v25 = vsel %vm2128_vm12, %v2398_v16, -inf  ;;  %v2131_v21 = vpop.xlane.xlu0 %2130 }
 0x9e4   :  { %v2407_v51 = vrot.slane %v2406_v25, 4  ;;  %v2135_v13 = vsel %vm2128_vm12, %v2131_v21, -inf }
 0x9e5   :  { %v2402_v42 = vrot.slane %v2401_v17, 2  ;;  %v2136_v44 = vrot.slane %v2135_v13, 4 }
 0x9e6   :  { %v2408_v36 = vmax.f32 %v2406_v25, %v2407_v51  ;;  %v2134_v50 = vpop.xlane.xlu1 %2133 }
 0x9e7   :  { %v2403_v34 = vmax.f32 %v2401_v17, %v2402_v42  ;;  %v2137_v30 = vmax.f32 %v2135_v13, %v2136_v44  ;;  %v2142_v46 = vsel %vm2128_vm12, %v2134_v50, -inf }
 0x9e8   :  { %v2409_v47 = vrot.slane %v2408_v36, 2  ;;  %v2143_v61 = vrot.slane %v2142_v46, 4 }
 0x9e9   :  { %v2404_v11 = vrot.slane %v2403_v34, 1  ;;  %v2138_v62 = vrot.slane %v2137_v30, 2 }
 0x9ea   :  { %v2410_v52 = vmax.f32 %v2408_v36, %v2409_v47  ;;  %v2144_v53 = vmax.f32 %v2142_v46, %v2143_v61 }
 0x9eb   :  { %v2405_v18 = vmax.f32 %v2403_v34, %v2404_v11  ;;  %v2139_v15 = vmax.f32 %v2137_v30, %v2138_v62  ;;  %v2459_v62 = vrot.slane %v4079_v45, %v3863_v22  ;;  %v2218_v45 = vrot.slane %v4045_v55, %v3863_v22 }
 0x9ec   :  { %v2411_v37 = vrot.slane %v2410_v52, 1  ;;  %v2145_v19 = vrot.slane %v2144_v53, 2  ;;  %v1401_v55 = vrot.slane %v3968_v32, %v3863_v22 }
 0x9ed   :  { %v2413_v26 = vsub.f32 %v2395_v12, %v2405_v18  ;;  %v2140_v28 = vrot.slane %v2139_v15, 1 }
 0x9ee   :  { %v2412_v27 = vmax.f32 %v2410_v52, %v2411_v37  ;;  %v2146_v14 = vmax.f32 %v2144_v53, %v2145_v19  ;;  %v2482_v37 = vrot.slane %v4087_v7, %v3863_v22 }
 0x9ef   :  { %v2415_v56 = vmul.f32 1.442695, %v2413_v26  ;;  %v2141_v24 = vmax.f32 %v2139_v15, %v2140_v28  ;;  %v2195_v26 = vrot.slane %v4040_v5, %v3863_v22 }
 0x9f0   :  { %v2414_v20 = vsub.f32 %v2398_v16, %v2412_v27  ;;  %v2147_v1 = vrot.slane %v2146_v14, 1 }
 0x9f1   :  { %3306 = vpow2.f32 %v2415_v56  ;;  %v2149_v3 = vsub.f32 %v2131_v21, %v2141_v24 }
 0x9f2   :  { %v2417_v23 = vmul.f32 1.442695, %v2414_v20  ;;  %v2148_v31 = vmax.f32 %v2146_v14, %v2147_v1 }
 0x9f3   :  { %v2151_v35 = vmul.f32 1.442695, %v2149_v3 }
 0x9f4   :  { %3308 = vpow2.f32 %v2417_v23  ;;  %v2150_v54 = vsub.f32 %v2134_v50, %v2148_v31 }
 0x9f5   :  { %3310 = vpow2.f32 %v2151_v35 }
 0x9f6   :  { %v2153_v63 = vmul.f32 1.442695, %v2150_v54 }
 0x9f8   :  { %3312 = vpow2.f32 %v2153_v63 }
 0x9fe   :  { %v3307_v8 = vpop.eup %3306 }
 0x9ff   :  { %v2419_v33 = vsel %vm2128_vm12, %v3307_v8, 0.0 }
 0xa00   :  { %v2420_v38 = vrot.slane %v2419_v33, 4 }
 0xa01   :  { %v3309_v9 = vpop.eup %3308 }
 0xa02   :  { %v3311_v58 = vpop.eup %3310  ;;  %v2421_v60 = vadd.f32 %v2420_v38, %v2419_v33  ;;  %v2426_v4 = vsel %vm2128_vm12, %v3309_v9, 0.0 }
 0xa03   :  { %v2427_v57 = vrot.slane %v2426_v4, 4  ;;  %v2155_v49 = vsel %vm2128_vm12, %v3311_v58, 0.0 }
 0xa04   :  { %v2422_v6 = vrot.slane %v2421_v60, 2  ;;  %v2156_v29 = vrot.slane %v2155_v49, 4 }
 0xa05   :  { %v3313_v10 = vpop.eup %3312  ;;  %v2428_v59 = vadd.f32 %v2427_v57, %v2426_v4 }
 0xa06   :  { %v2423_v2 = vadd.f32 %v2422_v6, %v2421_v60  ;;  %v2157_v12 = vadd.f32 %v2156_v29, %v2155_v49  ;;  %v2162_v41 = vsel %vm2128_vm12, %v3313_v10, 0.0 }
 0xa07   :  { %v2429_v48 = vrot.slane %v2428_v59, 2  ;;  %v2163_v16 = vrot.slane %v2162_v41, 4 }
 0xa08   :  { %v2424_v17 = vrot.slane %v2423_v2, 1  ;;  %v2158_v25 = vrot.slane %v2157_v12, 2 }
 0xa09   :  { %v2430_v21 = vadd.f32 %v2429_v48, %v2428_v59  ;;  %v2164_v51 = vadd.f32 %v2163_v16, %v2162_v41  ;;  %v4124_v48 = vrot.slane %v1401_v55, %v3863_v22 }
 0xa0a   :  { %v2425_v13 = vadd.f32 %v2424_v17, %v2423_v2  ;;  %v2159_v42 = vadd.f32 %v2158_v25, %v2157_v12  ;;  %v1409_v2 = vcombine.high %v1401_v55, %v1401_v55 }
 0xa0b   :  { %v2431_v44 = vrot.slane %v2430_v21, 1  ;;  %v2165_v36 = vrot.slane %v2164_v51, 2 }
 0xa0c   :  { %3314 = vrcp.f32 %v2425_v13  ;;  %v2160_v50 = vrot.slane %v2159_v42, 1 }
 0xa0d   :  { %v2432_v34 = vadd.f32 %v2431_v44, %v2430_v21  ;;  %v2166_v30 = vadd.f32 %v2165_v36, %v2164_v51  ;;  %v4129_v44 = vrot.slane %v1409_v2, %v3863_v22 }
 0xa0e   :  { %v2161_v46 = vadd.f32 %v2160_v50, %v2159_v42 }
 0xa0f   :  { %3316 = vrcp.f32 %v2432_v34  ;;  %v2167_v47 = vrot.slane %v2166_v30, 1 }
 0xa10   :  { %3318 = vrcp.f32 %v2161_v46 }
 0xa11   :  { %v2168_v61 = vadd.f32 %v2167_v47, %v2166_v30  ;;  %v4137_v30 = vcombine.high %v4124_v48, %v4124_v48 }
 0xa13   :  { %3320 = vrcp.f32 %v2168_v61 }
 0xa19   :  { %v3315_v11 = vpop.eup %3314 }
 0xa1a   :  { %v2435_v52 = vmul.f32 %v3315_v11, %v3307_v8  ;;  %v1394_v8 = vcombine.high %v3968_v32, %v3968_v32 }
 0xa1c   :  { %v3317_v53 = vpop.eup %3316  ;;  %v2485_v18 = vmul.f32 %v2459_v62, %v2435_v52  ;;  %v1408_v29 = vrot.slane %v1394_v8, %v3863_v22 }
 0xa1d   :  { %v3319_v15 = vpop.eup %3318  ;;  %v2436_v19 = vmul.f32 %v3317_v53, %v3309_v9 }
 0xa1e   :  { %v2487_v28 = vsel %vm2128_vm12, %v2485_v18, 0.0  ;;  %v2171_v27 = vmul.f32 %v3319_v15, %v3311_v58  ;;  %v1410_v21 = vcombine.high %v1408_v29, %v1408_v29  ;;  %v4141_v11 = vrot.slane %v1408_v29, %v3863_v22 }
 0xa1f   :  { %v2488_v14 = vrot.slane %v2487_v28, 4  ;;  %v2486_v56 = vmul.f32 %v2482_v37, %v2436_v19 }
 0xa20   :  { %v3321_v24 = vpop.eup %3320  ;;  %v2221_v20 = vmul.f32 %v2195_v26, %v2171_v27  ;;  %v4148_v19 = vrot.slane %v1410_v21, %v3863_v22  ;;  %v4152_v26 = vcombine.high %v4129_v44, %v4129_v44 }
 0xa21   :  { %v2489_v1 = vadd.f32 %v2488_v14, %v2487_v28  ;;  %v2494_v3 = vsel %vm2128_vm12, %v2486_v56, 0.0  ;;  %v2172_v23 = vmul.f32 %v3321_v24, %v3313_v10 }
 0xa22   :  { %v2495_v31 = vrot.slane %v2494_v3, 4  ;;  %v2223_v7 = vsel %vm2128_vm12, %v2221_v20, 0.0 }
 0xa23   :  { %v2490_v35 = vrot.slane %v2489_v1, 2  ;;  %v2222_v54 = vmul.f32 %v2218_v45, %v2172_v23  ;;  %v2224_v5 = vrot.slane %v2223_v7, 4 }
 0xa24   :  { %v2496_v63 = vadd.f32 %v2495_v31, %v2494_v3 }
 0xa25   :  { %v2491_v33 = vadd.f32 %v2490_v35, %v2489_v1  ;;  %v2225_v38 = vadd.f32 %v2224_v5, %v2223_v7  ;;  %v2230_v9 = vsel %vm2128_vm12, %v2222_v54, 0.0 }
 0xa26   :  { %v2497_v58 = vrot.slane %v2496_v63, 2  ;;  %v2231_v60 = vrot.slane %v2230_v9, 4 }
 0xa27   :  { %v2492_v4 = vrot.slane %v2491_v33, 1  ;;  %v2226_v57 = vrot.slane %v2225_v38, 2 }
 0xa28   :  { %v2498_v49 = vadd.f32 %v2497_v58, %v2496_v63  ;;  %v2232_v6 = vadd.f32 %v2231_v60, %v2230_v9 }
 0xa29   :  { %v2493_v10 = vadd.f32 %v2492_v4, %v2491_v33  ;;  %v2227_v59 = vadd.f32 %v2226_v57, %v2225_v38 }
 0xa2a   :  { %v2499_v12 = vrot.slane %v2498_v49, 1  ;;  %v2233_v41 = vrot.slane %v2232_v6, 2 }
 0xa2b   :  { %v2509_v16 = vrot.slane %v2493_v10, %v3863_v22  ;;  %2874 = vst [vmem:[#allocation8 + $0x3] sm:$0x1] %v2493_v10  ;;  %v2228_v32 = vrot.slane %v2227_v59, 1 }
 0xa2c   :  { %v2500_v17 = vadd.f32 %v2499_v12, %v2498_v49  ;;  %v2234_v25 = vadd.f32 %v2233_v41, %v2232_v6 }
 0xa2d   :  { %v2510_v51 = vcombine.high %v2509_v16, %v2509_v16  ;;  %v2517_v13 = vrot.slane %v2509_v16, %v3863_v22  ;;  %v2229_v42 = vadd.f32 %v2228_v32, %v2227_v59 }
 0xa2e   :  { %v2532_v36 = vrot.slane %v2500_v17, %v3863_v22  ;;  %2875 = vst [vmem:[#allocation8 + $0x7] sm:$0x1] %v2500_v17  ;;  %v2235_v50 = vrot.slane %v2234_v25, 1  ;;  %v4133_v34 = vsel %vm337_vm1, %v2500_v17, %v2493_v10 }
 0xa2f   :  { %v2524_v46 = vrot.slane %v2510_v51, %v3863_v22  ;;  %v2525_v47 = vcombine.high %v2517_v13, %v2517_v13  ;;  %v2621_v61 = vmul.f32 %v2493_v10, %v2229_v42  ;;  %v2555_v18 = vmul.f32 %v2517_v13, %v4124_v48 }
 0xa30   :  { %v2533_v62 = vcombine.high %v2532_v36, %v2532_v36  ;;  %v2540_v52 = vrot.slane %v2532_v36, %v3863_v22  ;;  %v2236_v53 = vadd.f32 %v2235_v50, %v2234_v25  ;;  %v2692_v51 = vcombine.low %v4124_v48, %v4129_v44 }
 0xa31   :  { %v2556_v15 = vmul.f32 %v2524_v46, %v4129_v44  ;;  %v2557_v37 = vmul.f32 %v2525_v47, %v4137_v30 }
 0xa32   :  { %v2547_v28 = vrot.slane %v2533_v62, %v3863_v22  ;;  %v2548_v27 = vcombine.high %v2540_v52, %v2540_v52  ;;  %v2622_v14 = vmul.f32 %v2500_v17, %v2236_v53  ;;  %v4156_v24 = vsel %vm337_vm1, %v2236_v53, %v2229_v42 }
 0xa33   :  { %v2567_v56 = vcombine.low %v2555_v18, %v2556_v15  ;;  %v2558_v20 = vmul.f32 %v2540_v52, %v4152_v26  ;;  %2823 = vst [vmem:[#allocation6] sm:$0x3] %v4156_v24  ;;  %v2581_v31 = vrot.slane %v2557_v37, %v3863_v22  ;;  %v2699_v42 = vrot.slane %v2692_v51, %v3863_v22 }
 0xa34   :  { %v2559_v45 = vmul.f32 %v2547_v28, %v4141_v11  ;;  %v2560_v1 = vmul.f32 %v2548_v27, %v4148_v19  ;;  %v2625_v3 = vsel %vm337_vm1, %v2622_v14, %v2621_v61 }
 0xa35   :  { %v2574_v23 = vrot.slane %v2567_v56, %v3863_v22  ;;  %v2627_v55 = vsel %vm1035_vm9, %v2625_v3, 0.0 }
 0xa36   :  { %v2590_v7 = vcombine.low %v2558_v20, %v2559_v45  ;;  %v2604_v5 = vrot.slane %v2560_v1, %v3863_v22  ;;  %v2729_v1 = vrot.slane %v4148_v19, %v3863_v22 }
 0xa37   :  { %v2582_v35 = vcombine.low %v2574_v23, %v2581_v31 }
 0xa38   :  { %v2597_v54 = vrot.slane %v2590_v7, %v3863_v22 }
 0xa39   :  { %v2589_v63 = vrot.slane %v2582_v35, %v3863_v22 }
 0xa3a   :  { %v2605_v8 = vcombine.low %v2597_v54, %v2604_v5 }
 0xa3b   :  { %v2615_v33 = vsel %vm2128_vm12, %v2589_v63, 0.0 }
 0xa3c   :  { %2616 = vadd.xlane.f32.xlu0 %v2615_v33  ;;  %v2612_v38 = vrot.slane %v2605_v8, %v3863_v22 }
 0xa3e   :  { %v2618_v9 = vsel %vm2128_vm12, %v2612_v38, 0.0 }
 0xa3f   :  { %2619 = vadd.xlane.f32.xlu1 %v2618_v9 }
 0xa40   :  { %2628 = vadd.xlane.f32.xlu0 %v2627_v55 }
 0xac5   :  { %v2617_v58 = vpop.xlane.xlu0 %2616 }
 0xac6   :  { %v2635_v4 = vrot.slane %v2617_v58, %v3570_v0 }
 0xac8   :  { %v2620_v60 = vpop.xlane.xlu1 %2619 }
 0xac9   :  { %v2639_v57 = vrot.slane %v2620_v60, %v3570_v0  ;;  %v2629_v29 = vpop.xlane.xlu0 %2628 }
 0xacb   :  { %v2640_v49 = vsel %vm337_vm1, %v2639_v57, %v2635_v4  ;;  %v2780_v57 = vpack.c.bf16 %v4133_v34, %v4133_v34 }
 0xacc   :  { %v2643_v6 = vsel %vm2642_vm13, %v2640_v49, -inf }
 0xacd   :  { %2644 = vmax.xlane.f32.xlu1 %v2643_v6 }
 0xb56   :  { %v2645_v10 = vpop.xlane.xlu1 %2644 }
 0xb57   :  { %v2646_v59 = vmax.f32 %v2645_v10, %v2629_v29 }
 0xb59   :  { %v2651_v2 = vrot.slane %v2646_v59, %v3607_v39  ;;  %v2655_v12 = vrot.slane %v2646_v59, %v3610_v40  ;;  %v2664_v13 = vsub.f32 %v2629_v29, %v2646_v59  ;;  %v2706_v39 = vrot.slane %v4137_v30, %v3863_v22 }
 0xb5b   :  { %v2658_v41 = vsub.f32 %v2617_v58, %v2651_v2  ;;  %v2659_v16 = vsub.f32 %v2620_v60, %v2655_v12  ;;  %v2665_v40 = vmul.f32 1.442695, %v2664_v13  ;;  %v2707_v36 = vcombine.low %v2699_v42, %v2706_v39 }
 0xb5d   :  { %v2660_v32 = vmul.f32 1.442695, %v2658_v41  ;;  %v2662_v17 = vmul.f32 1.442695, %v2659_v16  ;;  %v2714_v50 = vrot.slane %v2707_v36, %v3863_v22 }
 0xb5f   :  { %3322 = vpow2.f32 %v2660_v32 }
 0xb60   :  { %3324 = vpow2.f32 %v2662_v17 }
 0xb61   :  { %3326 = vpow2.f32 %v2665_v40 }
 0xb6c   :  { %v3323_v25 = vpop.eup %3322 }
 0xb6d   :  { %v3325_v21 = vpop.eup %3324  ;;  %2670 = vperm.xlu0 %3200, %v3323_v25  }
 0xb6e   :  { %2673 = vperm.xlu1 %3201, %v3325_v21   ;;  %v3327_v28 = vpop.eup %3326 }
 0xb6f   :  { %v2760_v14 = vmul.f32 %v3327_v28, %v4156_v24 }
 0xbe8   :  { %v2671_v46 = vpop.permute.xlu0 %2670 }
 0xbe9   :  { %v2674_v47 = vpop.permute.xlu1 %2673  ;;  %v2678_v61 = vrot.slane %v2671_v46, %v3570_v0  ;;  %v2740_v62 = vmul.f32 %v2714_v50, %v2671_v46 }
 0xbea   :  { %v2682_v52 = vrot.slane %v2674_v47, %v3570_v0  ;;  %v2715_v0 = vcombine.low %v4152_v26, %v4141_v11  ;;  %v2762_v26 = vrot.slane %v2760_v14, 1 }
 0xbeb   :  { %v2742_v48 = vsel %vm2128_vm12, %v2740_v62, 0.0 }
 0xbec   :  { %v2743_v44 = vrot.slane %v2742_v48, 4  ;;  %v2683_v53 = vsel %vm337_vm1, %v2682_v52, %v2678_v61  ;;  %v2722_v45 = vrot.slane %v2715_v0, %v3863_v22 }
 0xbed   :  { %v2685_v18 = vsel %vm2642_vm13, %v2683_v53, 0.0 }
 0xbee   :  { %v2744_v30 = vadd.f32 %v2743_v44, %v2742_v48  ;;  %2686 = vadd.xlane.f32.xlu1 %v2685_v18  ;;  %v2730_v3 = vcombine.low %v2722_v45, %v2729_v1 }
 0xbf0   :  { %v2745_v15 = vrot.slane %v2744_v30, 2  ;;  %v2737_v23 = vrot.slane %v2730_v3, %v3863_v22 }
 0xbf2   :  { %v2746_v37 = vadd.f32 %v2745_v15, %v2744_v30  ;;  %v2741_v31 = vmul.f32 %v2737_v23, %v2674_v47 }
 0xbf4   :  { %v2747_v27 = vrot.slane %v2746_v37, 1  ;;  %v2749_v7 = vsel %vm2128_vm12, %v2741_v31, 0.0 }
 0xbf5   :  { %v2750_v35 = vrot.slane %v2749_v7, 4 }
 0xbf6   :  { %v2748_v56 = vadd.f32 %v2747_v27, %v2746_v37 }
 0xbf7   :  { %v2751_v54 = vadd.f32 %v2750_v35, %v2749_v7 }
 0xbf8   :  { %v2765_v20 = vadd.f32 %v2760_v14, %v2748_v56 }
 0xbf9   :  { %v2752_v24 = vrot.slane %v2751_v54, 2 }
 0xbfb   :  { %v2753_v8 = vadd.f32 %v2752_v24, %v2751_v54 }
 0xbfd   :  { %v2754_v33 = vrot.slane %v2753_v8, 1 }
 0xbff   :  { %v2755_v11 = vadd.f32 %v2754_v33, %v2753_v8 }
 0xc01   :  { %v2766_v9 = vadd.f32 %v2762_v26, %v2755_v11 }
 0xc77   :  { %v2687_v5 = vpop.xlane.xlu1 %2686 }
 0xc78   :  { %v2688_v63 = vadd.f32 %v3327_v28, %v2687_v5 }
 0xc7a   :  { %3328 = vrcp.f32 %v2688_v63 }
 0xc87   :  { %v3329_v38 = vpop.eup %3328 }
 0xc88   :  { %v2768_v55 = vrot.slane %v3329_v38, 1  ;;  %v2771_v19 = vmul.f32 %v3329_v38, %v2765_v20 }
 0xc8a   :  { %v2772_v58 = vmul.f32 %v2768_v55, %v2766_v9 }
 0xc8c   :  { %v2777_v60 = vrot.slane %v2772_v58, 7 }
 0xc8e   :  { %v2778_v22 = vsel %vm337_vm1, %v2777_v60, %v2771_v19 }
 0xc8f   :  { %v2781_v4 = vpack.c.bf16 %v2778_v22, %v2778_v22 }
 0xc91   :  { %2814 = vmatprep.mubr.bf16.mxu0 %v2781_v4 }
 0xc92   :  { %2815 = vmatmul.mubr.bf16.vlgmr.msra.gmra.mxu0 %v2780_v57 }
 0xc93   :  { %3361 = shalt.err (!%p3358_p9)
}
 0xc94   :  { %2895 = dma.vmem_to_hbm [thread:$0]  %s2893_s22, 32, %s4223_s10, [#allocation7]  }
 0xc95   :  { %s3425_s23 = smov [#allocation8]  }
 0xc96   :  { %s2901_s24 = sshll.u32 %s3425_s23, 4  ;;  %s2902_s24 = int_to_ptr.vmem [resolvable:$true] %s2901_s24 }
 0xc97   :  { %s3370_s25 = scalar_lea.vmem %s2902_s24, 128  ;;  %p3375_p11 = scmp.lt.s32.totalorder %s2902_s24, %s2902_s24 }
 0xc98   :  { %p3371_p10 = scmp.ne.s32.totalorder %s2902_s24, %s3370_s25  ;;  %p3376_p12 = scmp.lt.s32.totalorder %s3370_s25, %s3370_s25 }
 0xc9a   :  { %p3377_p13 = por %p3376_p12, %p3375_p11 }
 0xc9c   :  { %p3378_p0 = pnand %p3377_p13, %p3371_p10 }
 0xc9e   :  { %3381 = shalt.err (!%p3378_p0)
}
 0xc9f   :  { %2907 = dma.vmem_to_hbm [thread:$0]  %s2902_s24, 128, %s4224_s11, [#allocation7], %s3417_s20, %s3417_s20, %s3418_s21  }
 0xca0   :  { %s3426_s10 = smov [#allocation5]  }
 0xca1   :  { %s2882_s28 = sshll.u32 %s3426_s10, 4  ;;  %s2883_s28 = int_to_ptr.vmem [resolvable:$true] %s2882_s28 }
 0xca2   :  { %s3390_s29 = scalar_lea.vmem %s2883_s28, 32  ;;  %p3395_p2 = scmp.lt.s32.totalorder %s2883_s28, %s2883_s28 }
 0xca3   :  { %p3391_p1 = scmp.ne.s32.totalorder %s2883_s28, %s3390_s29  ;;  %p3396_p3 = scmp.lt.s32.totalorder %s3390_s29, %s3390_s29 }
 0xca5   :  { %p3397_p4 = por %p3396_p3, %p3395_p2 }
 0xca7   :  { %p3398_p5 = pnand %p3397_p4, %p3391_p1 }
 0xd52   :  { %v3079_v34 = vpop.f32.mrf.mxu0 }
 0xd54   :  { %v3080_v49 = vpop.f32.mrf.mxu0 }
 0xd55   :  { %v3081_v6 = vadd.f32 %v3080_v49, %v3079_v34 }
 0xd56   :  { %v3082_v29 = vpop.f32.mrf.mxu0 }
 0xd57   :  { %v2817_v10 = vadd.f32 %v3081_v6, %v3965_v43 }
 0xd58   :  { %v3083_v59 = vpop.f32.mrf.mxu0 }
 0xd59   :  { %2822 = vst [vmem:[#allocation5] sm:$0x3] %v2817_v10 }
 0xd5a   :  { %3401 = shalt.err (!%p3398_p5)
}
 0xd5b   :  { %2885 = dma.vmem_to_hbm [thread:$0]  %s2883_s28, 32, %s4222_s9, [#allocation4]  }
 0xd5c   :  { %3412 = dma.done.wait [#allocation4], 32  }
 0xd5d   :  { %3413 = vsyncadd [#allocation4], 4294967264 }
 0xd5e   :  { %3414 = dma.done.wait [#allocation7], 160  }
 0xd5f   :  { %3415 = vsyncadd [#allocation7], 4294967136 }
 0xd60   :  { %2917 = vsyncpa [#allocation3], 1 }
 0xd61   :  { %2918 = vsyncpa [#allocation4], 1 }
 0xd62   :  { %2919 = vsyncpa [#allocation7], 1 }

</bundles_post_ra>
